<compile_context>
chip_gen: v7x
topology: tpu7x:2x2x1
jax: 0.10.0
libtpu: 0.0.40
codegen_flags: <defaults>
</compile_context>

<pallas_src>
import jax
import jax.numpy as jnp
from jax.experimental import pallas as pl
from jax.experimental.pallas import tpu as pltpu

# ---- small synthetic config (consistent with SiglipVisionConfig fields) ----
HIDDEN = 128         # hidden_size (lane-dense: multiple of 128)
INTERMEDIATE = 256   # intermediate_size
NUM_LAYERS = 3       # num_hidden_layers
NUM_HEADS = 4        # num_attention_heads
HEAD_DIM = HIDDEN // NUM_HEADS
SEQ = 16             # num patches / seq_len
BATCH = 2
EPS = 1e-6           # layer_norm_eps


def _layernorm(x, w, b):
    mean = jnp.mean(x, axis=-1, keepdims=True)
    var = jnp.mean((x - mean) ** 2, axis=-1, keepdims=True)
    return (x - mean) * jax.lax.rsqrt(var + EPS) * w + b


def encoder_kernel(x_ref, vec_ref, wqkv_ref, wow1_ref, w2_ref, o_ref):
    layer = pl.program_id(0)
    B, S, D = x_ref.shape
    I = INTERMEDIATE
    H, hd = NUM_HEADS, HEAD_DIM

    # Layer 0: seed the resident output block (the fp32 hidden-state carry)
    # from the input embeddings.
    @pl.when(layer == 0)
    def _():
        o_ref[...] = x_ref[...]

    x = o_ref[...].reshape(B * S, D)          # (B*S, D) fp32 residual stream

    # ---- packed per-layer parameters (one slab DMA each) ----
    vec = vec_ref[0]                          # (8, 3*D) vector slab
    ln1_w = vec[0:1, 0:D]
    ln1_b = vec[0:1, D:2 * D]
    bo    = vec[0:1, 2 * D:3 * D]
    ln2_w = vec[1:2, 0:D]
    ln2_b = vec[1:2, D:2 * D]
    b2    = vec[1:2, 2 * D:3 * D]
    bqkv  = vec[2:3, :]                       # (1, 3*D)  (Q part pre-scaled)
    b1    = vec[3:4, 0:I]                     # (1, I)

    wqkv = wqkv_ref[0]                        # (D, 3*D)  [Q|K|V], Q pre-scaled
    wow1 = wow1_ref[0]                        # (D, D + I)
    wo = wow1[:, 0:D]                         # (D, D)
    w1 = wow1[:, D:D + I]                     # (D, I)
    w2 = w2_ref[0]                            # (I, D)

    # ---- LayerNorm 1 + fused QKV projection (one lane-dense matmul) ----
    h = _layernorm(x, ln1_w, ln1_b)
    qkv = jnp.dot(h, wqkv, preferred_element_type=jnp.float32) + bqkv  # (B*S, 3D)
    q = qkv[:, 0:D]
    k = qkv[:, D:2 * D]
    v = qkv[:, 2 * D:3 * D]

    # Split the 128-lane Q/K/V groups into heads (leading head axis).
    def to_heads(t):                          # (B*S, D) -> (H, B*S, hd)
        return jnp.stack([t[:, i * hd:(i + 1) * hd] for i in range(H)], axis=0)

    qh, kh, vh = to_heads(q), to_heads(k), to_heads(v)

    # ---- per-batch, head-batched attention (exact fp32 softmax) ----
    ctx_parts = []
    for b in range(B):                        # B is tiny; static unroll
        lo, hi = b * S, (b + 1) * S
        qb, kb, vb = qh[:, lo:hi, :], kh[:, lo:hi, :], vh[:, lo:hi, :]
        s = jnp.einsum('hqd,hkd->hqk', qb, kb,
                       preferred_element_type=jnp.float32)   # scale folded in
        s = s - jnp.max(s, axis=-1, keepdims=True)
        p = jnp.exp(s)
        p = p / jnp.sum(p, axis=-1, keepdims=True)            # exact softmax
        ctx_parts.append(jnp.einsum('hqk,hkd->hqd', p, vb,
                                    preferred_element_type=jnp.float32))
    ctx_h = jnp.concatenate(ctx_parts, axis=1)                 # (H, B*S, hd)
    ctx = jnp.concatenate([ctx_h[i] for i in range(H)], axis=-1)  # (B*S, D)

    # Output projection: single K=128 contraction (head-sum folded in).
    attn = jnp.dot(ctx, wo, preferred_element_type=jnp.float32) + bo
    x = x + attn                                               # residual 1

    # ---- LayerNorm 2 + MLP (gelu, approximate='tanh') ----
    h2 = _layernorm(x, ln2_w, ln2_b)
    m = jnp.dot(h2, w1, preferred_element_type=jnp.float32) + b1
    m = jax.nn.gelu(m, approximate=True)
    m = jnp.dot(m, w2, preferred_element_type=jnp.float32) + b2

    o_ref[...] = (x + m).reshape(B, S, D)                      # residual 2


def siglip_vision_encoder(x, packed):
    """x: (B, S, D). packed: dict of per-layer-stacked kernel tensors."""
    B, S, D = x.shape
    L = packed["vec"].shape[0]
    I = INTERMEDIATE

    in_specs = [
        pl.BlockSpec((B, S, D), lambda l: (0, 0, 0)),            # x (layer-0 seed)
        pl.BlockSpec((1, 8, 3 * D), lambda l: (l, 0, 0)),        # vector slab
        pl.BlockSpec((1, D, 3 * D), lambda l: (l, 0, 0)),        # wqkv
        pl.BlockSpec((1, D, D + I), lambda l: (l, 0, 0)),        # [wo | w1]
        pl.BlockSpec((1, I, D), lambda l: (l, 0, 0)),            # w2
    ]
    out_spec = pl.BlockSpec((B, S, D), lambda l: (0, 0, 0))      # resident carry

    return pl.pallas_call(
        encoder_kernel,
        out_shape=jax.ShapeDtypeStruct((B, S, D), x.dtype),
        grid_spec=pltpu.PrefetchScalarGridSpec(
            num_scalar_prefetch=0,
            grid=(L,),                         # layer axis only (carry axis)
            in_specs=in_specs,
            out_specs=out_spec,
        ),
        compiler_params=pltpu.CompilerParams(
            dimension_semantics=("arbitrary",)),
    )(x, packed["vec"], packed["wqkv"], packed["wow1"], packed["w2"])


# ---------------- deterministic parameter init (PyTorch-like layout) --------
def init_layer_params(key):
    ks = jax.random.split(key, 16)

    def lin(kw, kb, din, dout):
        # weight stored pre-transposed: (in, out) so y = x @ W + b
        w = jax.random.normal(kw, (din, dout), jnp.float32) * (din ** -0.5)
        b = jax.random.normal(kb, (dout,), jnp.float32) * 0.02
        return w, b

    wq, bq = lin(ks[0], ks[1], HIDDEN, HIDDEN)
    wk, bk = lin(ks[2], ks[3], HIDDEN, HIDDEN)
    wv, bv = lin(ks[4], ks[5], HIDDEN, HIDDEN)
    wo, bo = lin(ks[6], ks[7], HIDDEN, HIDDEN)
    w1, b1 = lin(ks[8], ks[9], HIDDEN, INTERMEDIATE)
    w2, b2 = lin(ks[10], ks[11], INTERMEDIATE, HIDDEN)
    return dict(
        ln1_w=1.0 + 0.1 * jax.random.normal(ks[12], (HIDDEN,), jnp.float32),
        ln1_b=0.05 * jax.random.normal(ks[13], (HIDDEN,), jnp.float32),
        wq=wq, bq=bq, wk=wk, bk=bk, wv=wv, bv=bv, wo=wo, bo=bo,
        ln2_w=1.0 + 0.1 * jax.random.normal(ks[14], (HIDDEN,), jnp.float32),
        ln2_b=0.05 * jax.random.normal(ks[15], (HIDDEN,), jnp.float32),
        w1=w1, b1=b1, w2=w2, b2=b2,
    )


def pack_params(layer_params):
    """Pack per-layer PyTorch-style params into layer-stacked kernel slabs."""
    D, I = HIDDEN, INTERMEDIATE
    scale = HEAD_DIM ** -0.5
    assert I <= 3 * D

    def per_layer(p):
        # Fused QKV, Q columns pre-scaled by 1/sqrt(head_dim).
        wqkv = jnp.concatenate([p["wq"] * scale, p["wk"], p["wv"]], axis=1)  # (D, 3D)
        bqkv = jnp.concatenate([p["bq"] * scale, p["bk"], p["bv"]])          # (3D,)
        wow1 = jnp.concatenate([p["wo"], p["w1"]], axis=1)                   # (D, D+I)
        pad = jnp.zeros((3 * D - I,), jnp.float32)
        zrow = jnp.zeros((3 * D,), jnp.float32)
        vec = jnp.stack([
            jnp.concatenate([p["ln1_w"], p["ln1_b"], p["bo"]]),   # row 0
            jnp.concatenate([p["ln2_w"], p["ln2_b"], p["b2"]]),   # row 1
            bqkv,                                                 # row 2
            jnp.concatenate([p["b1"], pad]),                      # row 3
            zrow, zrow, zrow, zrow,                               # sublane pad
        ], axis=0)                                                # (8, 3D)
        return dict(vec=vec, wqkv=wqkv, wow1=wow1, w2=p["w2"])

    per = [per_layer(p) for p in layer_params]
    return {k: jnp.stack([d[k] for d in per], axis=0) for k in per[0]}


# ---------------- pure-JAX reference for verification -----------------------
def ref_layer(x, p):
    def ln(v, w, b):
        mu = jnp.mean(v, -1, keepdims=True)
        var = jnp.mean((v - mu) ** 2, -1, keepdims=True)
        return (v - mu) * jax.lax.rsqrt(var + EPS) * w + b

    B, S, D = x.shape
    h = ln(x, p["ln1_w"], p["ln1_b"])
    q = h @ p["wq"] + p["bq"]
    k = h @ p["wk"] + p["bk"]
    v = h @ p["wv"] + p["bv"]
    q = q.reshape(B, S, NUM_HEADS, HEAD_DIM).transpose(0, 2, 1, 3)
    k = k.reshape(B, S, NUM_HEADS, HEAD_DIM).transpose(0, 2, 1, 3)
    v = v.reshape(B, S, NUM_HEADS, HEAD_DIM).transpose(0, 2, 1, 3)
    s = jnp.einsum("bhqd,bhkd->bhqk", q, k) * (HEAD_DIM ** -0.5)
    p_attn = jax.nn.softmax(s.astype(jnp.float32), axis=-1)
    o = jnp.einsum("bhqk,bhkd->bhqd", p_attn, v)
    o = o.transpose(0, 2, 1, 3).reshape(B, S, D)
    o = o @ p["wo"] + p["bo"]
    x = x + o
    h2 = ln(x, p["ln2_w"], p["ln2_b"])
    m = jax.nn.gelu(h2 @ p["w1"] + p["b1"], approximate=True)
    m = m @ p["w2"] + p["b2"]
    return x + m


def ref_encoder(x, layer_params):
    for p in layer_params:
        x = ref_layer(x, p)
    return x


if __name__ == "__main__":
    root = jax.random.PRNGKey(0)
    k_in, *k_layers = jax.random.split(root, NUM_LAYERS + 1)

    inputs_embeds = jax.random.normal(k_in, (BATCH, SEQ, HIDDEN), jnp.float32)
    layer_params = [init_layer_params(k) for k in k_layers]
    packed = pack_params(layer_params)

    out = siglip_vision_encoder(inputs_embeds, packed)
    out = jax.block_until_ready(out)

    expected = ref_encoder(inputs_embeds, layer_params)
    assert out.shape == (BATCH, SEQ, HIDDEN)
    err = float(jnp.max(jnp.abs(out - expected)))
    # fp32 end-to-end with an exact softmax -> only matmul reassociation noise
    assert err < 1e-3, f"mismatch vs reference: {err}"

    print("KERNEL_OK")
</pallas_src>

<mosaic_0001>
module attributes {stable_mosaic.version = 11 : i64} {
  func.func @encoder_kernel(%arg0: i32, %arg1: memref<2x16x128xf32, #tpu.memory_space<vmem>>, %arg2: memref<1x8x384xf32, #tpu.memory_space<vmem>>, %arg3: memref<1x128x384xf32, #tpu.memory_space<vmem>>, %arg4: memref<1x128x384xf32, #tpu.memory_space<vmem>>, %arg5: memref<1x256x128xf32, #tpu.memory_space<vmem>>, %arg6: memref<2x16x128xf32, #tpu.memory_space<vmem>>) attributes {dimension_semantics = [#tpu.dimension_semantics<arbitrary>], iteration_bounds = array<i64: 3>, scalar_prefetch = 0 : i64, scratch_operands = 0 : i64, tpu.core_type = #tpu.core_type<tc>, window_params = [{pipeline_mode = #tpu.pipeline_mode<synchronous>, transform_indices = @transform_0, window_bounds = array<i64: 2, 16, 128>}, {transform_indices = @transform_1, window_bounds = array<i64: 1, 8, 384>}, {transform_indices = @transform_2, window_bounds = array<i64: 1, 128, 384>}, {transform_indices = @transform_3, window_bounds = array<i64: 1, 128, 384>}, {transform_indices = @transform_4, window_bounds = array<i64: 1, 256, 128>}, {pipeline_mode = #tpu.pipeline_mode<synchronous>, transform_indices = @transform_5, window_bounds = array<i64: 2, 16, 128>}]} {
    %c0_i32 = arith.constant 0 : i32
    %0 = arith.cmpi eq, %arg0, %c0_i32 : i32
    %1 = arith.extui %0 : i1 to i32
    %c0_i32_0 = arith.constant 0 : i32
    %2 = arith.cmpi ne, %1, %c0_i32_0 : i32
    scf.if %2 {
      %c0_43 = arith.constant 0 : index
      %c0_44 = arith.constant 0 : index
      %c0_45 = arith.constant 0 : index
      %164 = vector.load %arg1[%c0_43, %c0_44, %c0_45] : memref<2x16x128xf32, #tpu.memory_space<vmem>>, vector<2x16x128xf32>
      %c0_46 = arith.constant 0 : index
      %c0_47 = arith.constant 0 : index
      %c0_48 = arith.constant 0 : index
      %165 = vector.load %arg6[%c0_46, %c0_47, %c0_48] : memref<2x16x128xf32, #tpu.memory_space<vmem>>, vector<2x16x128xf32>
      tpu.vector_store %arg6[%c0_46, %c0_47, %c0_48], %164 {strides = array<i32>} : memref<2x16x128xf32, #tpu.memory_space<vmem>>, vector<2x16x128xf32>,
    } else {
    }
    %c0 = arith.constant 0 : index
    %c0_1 = arith.constant 0 : index
    %c0_2 = arith.constant 0 : index
    %3 = vector.load %arg6[%c0, %c0_1, %c0_2] : memref<2x16x128xf32, #tpu.memory_space<vmem>>, vector<2x16x128xf32>
    %4 = vector.shape_cast %3 : vector<2x16x128xf32> to vector<32x128xf32>
    %c0_3 = arith.constant 0 : index
    %c0_4 = arith.constant 0 : index
    %c0_5 = arith.constant 0 : index
    %5 = vector.load %arg2[%c0_3, %c0_4, %c0_5] : memref<1x8x384xf32, #tpu.memory_space<vmem>>, vector<1x8x384xf32>
    %6 = vector.shape_cast %5 : vector<1x8x384xf32> to vector<8x384xf32>
    %7 = vector.extract_strided_slice %6 {offsets = [0, 0], sizes = [1, 128], strides = [1, 1]} : vector<8x384xf32> to vector<1x128xf32>
    %8 = vector.extract_strided_slice %6 {offsets = [0, 128], sizes = [1, 128], strides = [1, 1]} : vector<8x384xf32> to vector<1x128xf32>
    %9 = vector.extract_strided_slice %6 {offsets = [0, 256], sizes = [1, 128], strides = [1, 1]} : vector<8x384xf32> to vector<1x128xf32>
    %10 = vector.extract_strided_slice %6 {offsets = [1, 0], sizes = [1, 128], strides = [1, 1]} : vector<8x384xf32> to vector<1x128xf32>
    %11 = vector.extract_strided_slice %6 {offsets = [1, 128], sizes = [1, 128], strides = [1, 1]} : vector<8x384xf32> to vector<1x128xf32>
    %12 = vector.extract_strided_slice %6 {offsets = [1, 256], sizes = [1, 128], strides = [1, 1]} : vector<8x384xf32> to vector<1x128xf32>
    %13 = vector.extract_strided_slice %6 {offsets = [2, 0], sizes = [1, 384], strides = [1, 1]} : vector<8x384xf32> to vector<1x384xf32>
    %14 = vector.extract_strided_slice %6 {offsets = [3, 0], sizes = [1, 256], strides = [1, 1]} : vector<8x384xf32> to vector<1x256xf32>
    %c0_6 = arith.constant 0 : index
    %c0_7 = arith.constant 0 : index
    %c0_8 = arith.constant 0 : index
    %15 = vector.load %arg3[%c0_6, %c0_7, %c0_8] : memref<1x128x384xf32, #tpu.memory_space<vmem>>, vector<1x128x384xf32>
    %16 = vector.shape_cast %15 : vector<1x128x384xf32> to vector<128x384xf32>
    %c0_9 = arith.constant 0 : index
    %c0_10 = arith.constant 0 : index
    %c0_11 = arith.constant 0 : index
    %17 = vector.load %arg4[%c0_9, %c0_10, %c0_11] : memref<1x128x384xf32, #tpu.memory_space<vmem>>, vector<1x128x384xf32>
    %18 = vector.shape_cast %17 : vector<1x128x384xf32> to vector<128x384xf32>
    %19 = vector.extract_strided_slice %18 {offsets = [0, 0], sizes = [128, 128], strides = [1, 1]} : vector<128x384xf32> to vector<128x128xf32>
    %20 = vector.extract_strided_slice %18 {offsets = [0, 128], sizes = [128, 256], strides = [1, 1]} : vector<128x384xf32> to vector<128x256xf32>
    %c0_12 = arith.constant 0 : index
    %c0_13 = arith.constant 0 : index
    %c0_14 = arith.constant 0 : index
    %21 = vector.load %arg5[%c0_12, %c0_13, %c0_14] : memref<1x256x128xf32, #tpu.memory_space<vmem>>, vector<1x256x128xf32>
    %22 = vector.shape_cast %21 : vector<1x256x128xf32> to vector<256x128xf32>
    %cst = arith.constant dense<0.000000e+00> : vector<32xf32>
    %23 = vector.multi_reduction <add>, %4, %cst [1] : vector<32x128xf32> to vector<32xf32>
    %24 = vector.shape_cast %23 : vector<32xf32> to vector<32x1xf32>
    %cst_15 = arith.constant 1.280000e+02 : f32
    %25 = vector.broadcast %cst_15 : f32 to vector<32x1xf32>
    %26 = arith.divf %24, %25 : vector<32x1xf32>
    %27 = vector.broadcast %26 : vector<32x1xf32> to vector<32x128xf32>
    %28 = arith.subf %4, %27 : vector<32x128xf32>
    %29 = arith.mulf %28, %28 : vector<32x128xf32>
    %cst_16 = arith.constant dense<0.000000e+00> : vector<32xf32>
    %30 = vector.multi_reduction <add>, %29, %cst_16 [1] : vector<32x128xf32> to vector<32xf32>
    %31 = vector.shape_cast %30 : vector<32xf32> to vector<32x1xf32>
    %cst_17 = arith.constant 1.280000e+02 : f32
    %32 = vector.broadcast %cst_17 : f32 to vector<32x1xf32>
    %33 = arith.divf %31, %32 : vector<32x1xf32>
    %34 = vector.broadcast %26 : vector<32x1xf32> to vector<32x128xf32>
    %35 = arith.subf %4, %34 : vector<32x128xf32>
    %cst_18 = arith.constant 9.99999997E-7 : f32
    %36 = vector.broadcast %cst_18 : f32 to vector<32x1xf32>
    %37 = arith.addf %33, %36 : vector<32x1xf32>
    %38 = math.rsqrt %37 : vector<32x1xf32>
    %39 = vector.broadcast %38 : vector<32x1xf32> to vector<32x128xf32>
    %40 = arith.mulf %35, %39 : vector<32x128xf32>
    %41 = vector.broadcast %7 : vector<1x128xf32> to vector<32x128xf32>
    %42 = arith.mulf %40, %41 : vector<32x128xf32>
    %43 = vector.broadcast %8 : vector<1x128xf32> to vector<32x128xf32>
    %44 = arith.addf %42, %43 : vector<32x128xf32>
    %cst_19 = arith.constant dense<0.000000e+00> : vector<32x384xf32>
    %45 = tpu.matmul %44, %16, %cst_19 {dimension_numbers = #tpu.dot_dimension_numbers<[1], [0], [0], [1], [0, 0, 1, 1], [], []>} : vector<32x128xf32>, vector<128x384xf32>, vector<32x384xf32> -> vector<32x384xf32>
    %46 = vector.broadcast %13 : vector<1x384xf32> to vector<32x384xf32>
    %47 = arith.addf %45, %46 : vector<32x384xf32>
    %48 = vector.extract_strided_slice %47 {offsets = [0, 0], sizes = [32, 128], strides = [1, 1]} : vector<32x384xf32> to vector<32x128xf32>
    %49 = vector.extract_strided_slice %47 {offsets = [0, 128], sizes = [32, 128], strides = [1, 1]} : vector<32x384xf32> to vector<32x128xf32>
    %50 = vector.extract_strided_slice %47 {offsets = [0, 256], sizes = [32, 128], strides = [1, 1]} : vector<32x384xf32> to vector<32x128xf32>
    %51 = vector.extract_strided_slice %48 {offsets = [0, 0], sizes = [32, 32], strides = [1, 1]} : vector<32x128xf32> to vector<32x32xf32>
    %52 = vector.extract_strided_slice %48 {offsets = [0, 32], sizes = [32, 32], strides = [1, 1]} : vector<32x128xf32> to vector<32x32xf32>
    %53 = vector.extract_strided_slice %48 {offsets = [0, 64], sizes = [32, 32], strides = [1, 1]} : vector<32x128xf32> to vector<32x32xf32>
    %54 = vector.extract_strided_slice %48 {offsets = [0, 96], sizes = [32, 32], strides = [1, 1]} : vector<32x128xf32> to vector<32x32xf32>
    %55 = vector.shape_cast %51 : vector<32x32xf32> to vector<1x32x32xf32>
    %56 = vector.shape_cast %52 : vector<32x32xf32> to vector<1x32x32xf32>
    %57 = vector.shape_cast %53 : vector<32x32xf32> to vector<1x32x32xf32>
    %58 = vector.shape_cast %54 : vector<32x32xf32> to vector<1x32x32xf32>
    %59 = tpu.concatenate %55, %56, %57, %58 in 0 : vector<1x32x32xf32>, vector<1x32x32xf32>, vector<1x32x32xf32>, vector<1x32x32xf32> -> vector<4x32x32xf32>
    %60 = vector.extract_strided_slice %49 {offsets = [0, 0], sizes = [32, 32], strides = [1, 1]} : vector<32x128xf32> to vector<32x32xf32>
    %61 = vector.extract_strided_slice %49 {offsets = [0, 32], sizes = [32, 32], strides = [1, 1]} : vector<32x128xf32> to vector<32x32xf32>
    %62 = vector.extract_strided_slice %49 {offsets = [0, 64], sizes = [32, 32], strides = [1, 1]} : vector<32x128xf32> to vector<32x32xf32>
    %63 = vector.extract_strided_slice %49 {offsets = [0, 96], sizes = [32, 32], strides = [1, 1]} : vector<32x128xf32> to vector<32x32xf32>
    %64 = vector.shape_cast %60 : vector<32x32xf32> to vector<1x32x32xf32>
    %65 = vector.shape_cast %61 : vector<32x32xf32> to vector<1x32x32xf32>
    %66 = vector.shape_cast %62 : vector<32x32xf32> to vector<1x32x32xf32>
    %67 = vector.shape_cast %63 : vector<32x32xf32> to vector<1x32x32xf32>
    %68 = tpu.concatenate %64, %65, %66, %67 in 0 : vector<1x32x32xf32>, vector<1x32x32xf32>, vector<1x32x32xf32>, vector<1x32x32xf32> -> vector<4x32x32xf32>
    %69 = vector.extract_strided_slice %50 {offsets = [0, 0], sizes = [32, 32], strides = [1, 1]} : vector<32x128xf32> to vector<32x32xf32>
    %70 = vector.extract_strided_slice %50 {offsets = [0, 32], sizes = [32, 32], strides = [1, 1]} : vector<32x128xf32> to vector<32x32xf32>
    %71 = vector.extract_strided_slice %50 {offsets = [0, 64], sizes = [32, 32], strides = [1, 1]} : vector<32x128xf32> to vector<32x32xf32>
    %72 = vector.extract_strided_slice %50 {offsets = [0, 96], sizes = [32, 32], strides = [1, 1]} : vector<32x128xf32> to vector<32x32xf32>
    %73 = vector.shape_cast %69 : vector<32x32xf32> to vector<1x32x32xf32>
    %74 = vector.shape_cast %70 : vector<32x32xf32> to vector<1x32x32xf32>
    %75 = vector.shape_cast %71 : vector<32x32xf32> to vector<1x32x32xf32>
    %76 = vector.shape_cast %72 : vector<32x32xf32> to vector<1x32x32xf32>
    %77 = tpu.concatenate %73, %74, %75, %76 in 0 : vector<1x32x32xf32>, vector<1x32x32xf32>, vector<1x32x32xf32>, vector<1x32x32xf32> -> vector<4x32x32xf32>
    %78 = vector.extract_strided_slice %59 {offsets = [0, 0, 0], sizes = [4, 16, 32], strides = [1, 1, 1]} : vector<4x32x32xf32> to vector<4x16x32xf32>
    %79 = vector.extract_strided_slice %68 {offsets = [0, 0, 0], sizes = [4, 16, 32], strides = [1, 1, 1]} : vector<4x32x32xf32> to vector<4x16x32xf32>
    %80 = vector.extract_strided_slice %77 {offsets = [0, 0, 0], sizes = [4, 16, 32], strides = [1, 1, 1]} : vector<4x32x32xf32> to vector<4x16x32xf32>
    "tpu.trace_start"() <{level = 10 : i32, message = "hqd,hkd->hqk"}> : () -> ()
    %cst_20 = arith.constant dense<0.000000e+00> : vector<4x16x16xf32>
    %81 = tpu.matmul %78, %79, %cst_20 {dimension_numbers = #tpu.dot_dimension_numbers<[2], [2], [1], [1], [0, 0, 0, 1, 1, 1], [0], [0]>} : vector<4x16x32xf32>, vector<4x16x32xf32>, vector<4x16x16xf32> -> vector<4x16x16xf32>
    "tpu.trace_stop"() : () -> ()
    %cst_21 = arith.constant dense<0xFF800000> : vector<4x16xf32>
    %82 = vector.multi_reduction <maximumf>, %81, %cst_21 [2] : vector<4x16x16xf32> to vector<4x16xf32>
    %83 = vector.shape_cast %82 : vector<4x16xf32> to vector<4x16x1xf32>
    %84 = vector.broadcast %83 : vector<4x16x1xf32> to vector<4x16x16xf32>
    %85 = arith.subf %81, %84 : vector<4x16x16xf32>
    %86 = math.exp %85 : vector<4x16x16xf32>
    %cst_22 = arith.constant dense<0.000000e+00> : vector<4x16xf32>
    %87 = vector.multi_reduction <add>, %86, %cst_22 [2] : vector<4x16x16xf32> to vector<4x16xf32>
    %88 = vector.shape_cast %87 : vector<4x16xf32> to vector<4x16x1xf32>
    %89 = vector.broadcast %88 : vector<4x16x1xf32> to vector<4x16x16xf32>
    %90 = arith.divf %86, %89 : vector<4x16x16xf32>
    "tpu.trace_start"() <{level = 10 : i32, message = "hqk,hkd->hqd"}> : () -> ()
    %cst_23 = arith.constant dense<0.000000e+00> : vector<4x16x32xf32>
    %91 = tpu.matmul %90, %80, %cst_23 {dimension_numbers = #tpu.dot_dimension_numbers<[2], [1], [1], [2], [0, 0, 0, 1, 1, 2], [0], [0]>} : vector<4x16x16xf32>, vector<4x16x32xf32>, vector<4x16x32xf32> -> vector<4x16x32xf32>
    "tpu.trace_stop"() : () -> ()
    %92 = vector.extract_strided_slice %59 {offsets = [0, 16, 0], sizes = [4, 16, 32], strides = [1, 1, 1]} : vector<4x32x32xf32> to vector<4x16x32xf32>
    %93 = vector.extract_strided_slice %68 {offsets = [0, 16, 0], sizes = [4, 16, 32], strides = [1, 1, 1]} : vector<4x32x32xf32> to vector<4x16x32xf32>
    %94 = vector.extract_strided_slice %77 {offsets = [0, 16, 0], sizes = [4, 16, 32], strides = [1, 1, 1]} : vector<4x32x32xf32> to vector<4x16x32xf32>
    "tpu.trace_start"() <{level = 10 : i32, message = "hqd,hkd->hqk"}> : () -> ()
    %cst_24 = arith.constant dense<0.000000e+00> : vector<4x16x16xf32>
    %95 = tpu.matmul %92, %93, %cst_24 {dimension_numbers = #tpu.dot_dimension_numbers<[2], [2], [1], [1], [0, 0, 0, 1, 1, 1], [0], [0]>} : vector<4x16x32xf32>, vector<4x16x32xf32>, vector<4x16x16xf32> -> vector<4x16x16xf32>
    "tpu.trace_stop"() : () -> ()
    %cst_25 = arith.constant dense<0xFF800000> : vector<4x16xf32>
    %96 = vector.multi_reduction <maximumf>, %95, %cst_25 [2] : vector<4x16x16xf32> to vector<4x16xf32>
    %97 = vector.shape_cast %96 : vector<4x16xf32> to vector<4x16x1xf32>
    %98 = vector.broadcast %97 : vector<4x16x1xf32> to vector<4x16x16xf32>
    %99 = arith.subf %95, %98 : vector<4x16x16xf32>
    %100 = math.exp %99 : vector<4x16x16xf32>
    %cst_26 = arith.constant dense<0.000000e+00> : vector<4x16xf32>
    %101 = vector.multi_reduction <add>, %100, %cst_26 [2] : vector<4x16x16xf32> to vector<4x16xf32>
    %102 = vector.shape_cast %101 : vector<4x16xf32> to vector<4x16x1xf32>
    %103 = vector.broadcast %102 : vector<4x16x1xf32> to vector<4x16x16xf32>
    %104 = arith.divf %100, %103 : vector<4x16x16xf32>
    "tpu.trace_start"() <{level = 10 : i32, message = "hqk,hkd->hqd"}> : () -> ()
    %cst_27 = arith.constant dense<0.000000e+00> : vector<4x16x32xf32>
    %105 = tpu.matmul %104, %94, %cst_27 {dimension_numbers = #tpu.dot_dimension_numbers<[2], [1], [1], [2], [0, 0, 0, 1, 1, 2], [0], [0]>} : vector<4x16x16xf32>, vector<4x16x32xf32>, vector<4x16x32xf32> -> vector<4x16x32xf32>
    "tpu.trace_stop"() : () -> ()
    %106 = tpu.concatenate %91, %105 in 1 : vector<4x16x32xf32>, vector<4x16x32xf32> -> vector<4x32x32xf32>
    %107 = vector.extract_strided_slice %106 {offsets = [0, 0, 0], sizes = [1, 32, 32], strides = [1, 1, 1]} : vector<4x32x32xf32> to vector<1x32x32xf32>
    %108 = vector.shape_cast %107 : vector<1x32x32xf32> to vector<32x32xf32>
    %109 = vector.extract_strided_slice %106 {offsets = [1, 0, 0], sizes = [1, 32, 32], strides = [1, 1, 1]} : vector<4x32x32xf32> to vector<1x32x32xf32>
    %110 = vector.shape_cast %109 : vector<1x32x32xf32> to vector<32x32xf32>
    %111 = vector.extract_strided_slice %106 {offsets = [2, 0, 0], sizes = [1, 32, 32], strides = [1, 1, 1]} : vector<4x32x32xf32> to vector<1x32x32xf32>
    %112 = vector.shape_cast %111 : vector<1x32x32xf32> to vector<32x32xf32>
    %113 = vector.extract_strided_slice %106 {offsets = [3, 0, 0], sizes = [1, 32, 32], strides = [1, 1, 1]} : vector<4x32x32xf32> to vector<1x32x32xf32>
    %114 = vector.shape_cast %113 : vector<1x32x32xf32> to vector<32x32xf32>
    %115 = tpu.concatenate %108, %110, %112, %114 in 1 : vector<32x32xf32>, vector<32x32xf32>, vector<32x32xf32>, vector<32x32xf32> -> vector<32x128xf32>
    %cst_28 = arith.constant dense<0.000000e+00> : vector<32x128xf32>
    %116 = tpu.matmul %115, %19, %cst_28 {dimension_numbers = #tpu.dot_dimension_numbers<[1], [0], [0], [1], [0, 0, 1, 1], [], []>} : vector<32x128xf32>, vector<128x128xf32>, vector<32x128xf32> -> vector<32x128xf32>
    %117 = vector.broadcast %9 : vector<1x128xf32> to vector<32x128xf32>
    %118 = arith.addf %116, %117 : vector<32x128xf32>
    %119 = arith.addf %4, %118 : vector<32x128xf32>
    %cst_29 = arith.constant dense<0.000000e+00> : vector<32xf32>
    %120 = vector.multi_reduction <add>, %119, %cst_29 [1] : vector<32x128xf32> to vector<32xf32>
    %121 = vector.shape_cast %120 : vector<32xf32> to vector<32x1xf32>
    %cst_30 = arith.constant 1.280000e+02 : f32
    %122 = vector.broadcast %cst_30 : f32 to vector<32x1xf32>
    %123 = arith.divf %121, %122 : vector<32x1xf32>
    %124 = vector.broadcast %123 : vector<32x1xf32> to vector<32x128xf32>
    %125 = arith.subf %119, %124 : vector<32x128xf32>
    %126 = arith.mulf %125, %125 : vector<32x128xf32>
    %cst_31 = arith.constant dense<0.000000e+00> : vector<32xf32>
    %127 = vector.multi_reduction <add>, %126, %cst_31 [1] : vector<32x128xf32> to vector<32xf32>
    %128 = vector.shape_cast %127 : vector<32xf32> to vector<32x1xf32>
    %cst_32 = arith.constant 1.280000e+02 : f32
    %129 = vector.broadcast %cst_32 : f32 to vector<32x1xf32>
    %130 = arith.divf %128, %129 : vector<32x1xf32>
    %131 = vector.broadcast %123 : vector<32x1xf32> to vector<32x128xf32>
    %132 = arith.subf %119, %131 : vector<32x128xf32>
    %cst_33 = arith.constant 9.99999997E-7 : f32
    %133 = vector.broadcast %cst_33 : f32 to vector<32x1xf32>
    %134 = arith.addf %130, %133 : vector<32x1xf32>
    %135 = math.rsqrt %134 : vector<32x1xf32>
    %136 = vector.broadcast %135 : vector<32x1xf32> to vector<32x128xf32>
    %137 = arith.mulf %132, %136 : vector<32x128xf32>
    %138 = vector.broadcast %10 : vector<1x128xf32> to vector<32x128xf32>
    %139 = arith.mulf %137, %138 : vector<32x128xf32>
    %140 = vector.broadcast %11 : vector<1x128xf32> to vector<32x128xf32>
    %141 = arith.addf %139, %140 : vector<32x128xf32>
    %cst_34 = arith.constant dense<0.000000e+00> : vector<32x256xf32>
    %142 = tpu.matmul %141, %20, %cst_34 {dimension_numbers = #tpu.dot_dimension_numbers<[1], [0], [0], [1], [0, 0, 1, 1], [], []>} : vector<32x128xf32>, vector<128x256xf32>, vector<32x256xf32> -> vector<32x256xf32>
    %143 = vector.broadcast %14 : vector<1x256xf32> to vector<32x256xf32>
    %144 = arith.addf %142, %143 : vector<32x256xf32>
    %145 = arith.mulf %144, %144 : vector<32x256xf32>
    %146 = arith.mulf %144, %145 : vector<32x256xf32>
    %cst_35 = arith.constant 4.471500e-02 : f32
    %147 = vector.broadcast %cst_35 : f32 to vector<32x256xf32>
    %148 = arith.mulf %147, %146 : vector<32x256xf32>
    %149 = arith.addf %144, %148 : vector<32x256xf32>
    %cst_36 = arith.constant 0.797884583 : f32
    %150 = vector.broadcast %cst_36 : f32 to vector<32x256xf32>
    %151 = arith.mulf %150, %149 : vector<32x256xf32>
    %152 = math.tanh %151 : vector<32x256xf32>
    %cst_37 = arith.constant 1.000000e+00 : f32
    %153 = vector.broadcast %cst_37 : f32 to vector<32x256xf32>
    %154 = arith.addf %153, %152 : vector<32x256xf32>
    %cst_38 = arith.constant 5.000000e-01 : f32
    %155 = vector.broadcast %cst_38 : f32 to vector<32x256xf32>
    %156 = arith.mulf %155, %154 : vector<32x256xf32>
    %157 = arith.mulf %144, %156 : vector<32x256xf32>
    %cst_39 = arith.constant dense<0.000000e+00> : vector<32x128xf32>
    %158 = tpu.matmul %157, %22, %cst_39 {dimension_numbers = #tpu.dot_dimension_numbers<[1], [0], [0], [1], [0, 0, 1, 1], [], []>} : vector<32x256xf32>, vector<256x128xf32>, vector<32x128xf32> -> vector<32x128xf32>
    %159 = vector.broadcast %12 : vector<1x128xf32> to vector<32x128xf32>
    %160 = arith.addf %158, %159 : vector<32x128xf32>
    %161 = arith.addf %119, %160 : vector<32x128xf32>
    %162 = vector.shape_cast %161 : vector<32x128xf32> to vector<2x16x128xf32>
    %c0_40 = arith.constant 0 : index
    %c0_41 = arith.constant 0 : index
    %c0_42 = arith.constant 0 : index
    %163 = vector.load %arg6[%c0_40, %c0_41, %c0_42] : memref<2x16x128xf32, #tpu.memory_space<vmem>>, vector<2x16x128xf32>
    tpu.vector_store %arg6[%c0_40, %c0_41, %c0_42], %162 {strides = array<i32>} : memref<2x16x128xf32, #tpu.memory_space<vmem>>, vector<2x16x128xf32>,
    return
  }
  func.func @transform_0(%arg0: i32) -> (i32, i32, i32) {
    %c0_i32 = arith.constant 0 : i32
    %c0_i32_0 = arith.constant 0 : i32
    %c0_i32_1 = arith.constant 0 : i32
    %c0_i32_2 = arith.constant 0 : i32
    return %c0_i32, %c0_i32_0, %c0_i32_1 : i32, i32, i32
  }
  func.func @transform_1(%arg0: i32) -> (i32, i32, i32) {
    %c0_i32 = arith.constant 0 : i32
    %c0_i32_0 = arith.constant 0 : i32
    %c0_i32_1 = arith.constant 0 : i32
    return %arg0, %c0_i32, %c0_i32_0 : i32, i32, i32
  }
  func.func @transform_2(%arg0: i32) -> (i32, i32, i32) {
    %c0_i32 = arith.constant 0 : i32
    %c0_i32_0 = arith.constant 0 : i32
    %c0_i32_1 = arith.constant 0 : i32
    return %arg0, %c0_i32, %c0_i32_0 : i32, i32, i32
  }
  func.func @transform_3(%arg0: i32) -> (i32, i32, i32) {
    %c0_i32 = arith.constant 0 : i32
    %c0_i32_0 = arith.constant 0 : i32
    %c0_i32_1 = arith.constant 0 : i32
    return %arg0, %c0_i32, %c0_i32_0 : i32, i32, i32
  }
  func.func @transform_4(%arg0: i32) -> (i32, i32, i32) {
    %c0_i32 = arith.constant 0 : i32
    %c0_i32_0 = arith.constant 0 : i32
    %c0_i32_1 = arith.constant 0 : i32
    return %arg0, %c0_i32, %c0_i32_0 : i32, i32, i32
  }
  func.func @transform_5(%arg0: i32) -> (i32, i32, i32) {
    %c0_i32 = arith.constant 0 : i32
    %c0_i32_0 = arith.constant 0 : i32
    %c0_i32_1 = arith.constant 0 : i32
    %c0_i32_2 = arith.constant 0 : i32
    return %c0_i32, %c0_i32_0, %c0_i32_1 : i32, i32, i32
  }
}

</mosaic_0001>

<bundles_post_ra>
// kernel: tpu_custom_call.1
= control target key start
LH: loop header
LB: loop body
LE: loop exit
PB: predicated region body
PF: predicated region fallthrough
CT: control target
= control target key end

     0   :  { %s4999_s0 = inlined_call_operand.hbm [shape: f32[2,16,128], index: 0, kind: input, shape index: {}]   ;;  %s5000_s1 = inlined_call_operand.hbm [shape: f32[3,8,384], index: 1, kind: input, shape index: {}]   ;;  %s5001_s2 = inlined_call_operand.hbm [shape: f32[3,128,384], index: 2, kind: input, shape index: {}]   ;;  %s5002_s3 = inlined_call_operand.hbm [shape: f32[3,128,384], index: 3, kind: input, shape index: {}]   ;;  %s5003_s4 = inlined_call_operand.hbm [shape: f32[3,256,128], index: 4, kind: input, shape index: {}]   ;;  %s5004_s5 = inlined_call_operand.hbm [shape: f32[2,16,128], index: 5, kind: output, shape index: {}]  }
   0x1   :  { %5014 = sst [smem:[#allocation16_spill]] %s5000_s1 }
   0x2   :  { %10 = vsyncpa [#allocation3], 0 }
   0x3   :  { %11 = vsyncpa [#allocation6], 0 }
   0x4   :  { %13 = vsyncpa [#allocation6 + $0x1], 0 }
   0x5   :  { %14 = vsyncpa [#allocation9], 0 }
   0x6   :  { %16 = vsyncpa [#allocation9 + $0x1], 0 }
   0x7   :  { %17 = vsyncpa [#allocation4], 0  ;;  %s4147_s18 = smov 0   ;;  %s4149_s19 = smov 0  }
   0x8   :  { %s4151_s20 = smov 0   ;;  %s4153_s21 = smov 0  }
   0x9 LB: > { %s4168_s22 = sadd.s32 1, %s4099_s21   ;;  %s51_s23 = sadd.s32 1, %s4095_s20  ;;  %s4099_s21 = sphi %s4153_s21, %s5036_s21   ;;  %s4095_s20 = sphi %s4151_s20, %s5035_s20   ;;  %s4091_s19 = sphi %s4149_s19, %s5034_s19   ;;  %s4087_s18 = sphi %s4147_s18, %s5033_s18  }
   0xa   : > { %s48_s24 = ssub.s32 %s4099_s21, %s4168_s22  ;;  %p58_p0 = scmp.ne.s32.totalorder %s4095_s20, %s4091_s19 }
   0xb   : > { %p49_p1 = scmp.eq.s32.totalorder %s48_s24, 0  ;;  %p59_p2 = scmp.eq.s32.totalorder %s4099_s21, 0 }
   0xc   : > { %p3638_p3 = scmp.lt.s32.totalorder %s4099_s21, 3  ;;  %s200_s26 = sand.u32 1, %s4099_s21  }
   0xd   : > { %s4178_s25 = scalar_select %p49_p1, %s4095_s20, %s51_s23  }
   0xe   : > { %p60_p4 = por %p59_p2, %p58_p0  ;;  %s4182_s27 = sand.u32 1, %s4095_s20  }
   0xf   : > { %s3596_s28 = smul.u32 24, %s4182_s27  ;;  %s5016_s1 = sld [smem:[#allocation16_spill]] }
  0x10   : > { %p4185_p5 = pnand %p3638_p3, %p60_p4  ;;  %s3597_s30 = smul.u32 384, %s4099_s21 }
  0x11   : > { %s204_s9 = scalar_lea.vmem [#allocation5], %s3596_s28  ;;  %s3598_s11 = smul.u32 384, %s4182_s27 }
  0x12   : > { %s5015_s29 = scalar_select %p4185_p5, 1, 0 }
  0x13   : > { %s212_s10 = sshll.u32 %s204_s9, 4  ;;  %s4200_s12 = scalar_lea.sflag [#allocation6], %s200_s26  ;;  %s4195_s10 = int_to_ptr.vmem [resolvable:$true] %s212_s10 }
  0x14   : > { %p4206_p7 = pneg %p4185_p5 }
  0x15   : > { %s4193_s8 = scalar_lea.hbm %s5016_s1, %s3597_s30  ;;  %s3884_s17 = scalar_lea.hbm %s5016_s1, 1152 }
  0x16   : > { %s3879_s13 = scalar_lea.hbm %s4193_s8, 384  ;;  %p3885_p10 = scmp.lt.u32.totalorder %s4193_s8, %s5016_s1 }
  0x17   : > { %p3880_p6 = scmp.ne.s32.totalorder %s4193_s8, %s3879_s13  ;;  %p3886_p11 = scmp.lt.u32.totalorder %s3884_s17, %s3879_s13 }
  0x18   : > { %s5017_s14 = scalar_select %p4206_p7, 1, 0 }
  0x19   : > { %p3882_p8 = pnand %p4206_p7, %p3880_p6  ;;  %p3887_p12 = por %p3886_p11, %p3885_p10 }
  0x1a   : > { %p3888_p13 = scmp.lt.u32.totalorder %s3879_s13, %s4193_s8 }
  0x1b   : > { %p3883_p9 = pneg %p3882_p8 }
  0x1c   : > { %p3889_p0 = por %p3888_p13, %p3887_p12 }
  0x1e   : > { %p3890_p1 = pnand %p3889_p0, %p3883_p9 }
  0x20   : > { %3893 = shalt.err (!%p3890_p1)
}
  0x21   : > { %s3894_s28 = scalar_lea.vmem %s4195_s10, 384  ;;  %s4101_s30 = smov [#allocation5]  }
  0x22   : > { %p3895_p2 = scmp.ne.s32.totalorder %s4195_s10, %s3894_s28  ;;  %s3899_s6 = sshll.u32 %s4101_s30, 4  ;;  %s3900_s6 = int_to_ptr.vmem [resolvable:$false] %s3899_s6 }
  0x23   : > { %s3901_s7 = scalar_lea.vmem %s3900_s6, 768  ;;  %p3902_p6 = scmp.lt.s32.totalorder %s4195_s10, %s3900_s6 }
  0x24   : > { %p3897_p3 = pnand %p3895_p2, %p4206_p7  ;;  %p3903_p8 = scmp.lt.s32.totalorder %s3901_s7, %s3894_s28 }
  0x26   : > { %p3898_p4 = pneg %p3897_p3  ;;  %p3904_p10 = por %p3903_p8, %p3902_p6 }
  0x28   : > { %p3905_p11 = pnand %p3904_p10, %p3898_p4 }
  0x2a   : > { %3908 = shalt.err (!%p3905_p11)
}
  0x2b   : > { %3627 = dma.hbm_to_vmem [thread:$0]  (!%p4185_p5), %s4193_s8, 384, %s4195_s10, %s4200_s12  }
  0x2c   : > { %s2960_s9 = sshll.u32 %s4182_s27, 8  ;;  %s223_s13 = scalar_lea.vmem [#allocation7], %s3598_s11 }
  0x2d   : > { %s230_s15 = sshll.u32 %s223_s13, 4  ;;  %s265_s16 = scalar_lea.vmem [#allocation10], %s2960_s9  ;;  %s4233_s15 = int_to_ptr.vmem [resolvable:$true] %s230_s15 }
  0x2e   : > { %s272_s17 = sshll.u32 %s265_s16, 4  ;;  %s3599_s23 = smul.u32 6144, %s4099_s21  ;;  %s4235_s17 = int_to_ptr.vmem [resolvable:$true] %s272_s17 }
  0x2f   : > { %s244_s8 = scalar_lea.vmem [#allocation8], %s3598_s11  ;;  %s4251_s6 = scalar_lea.sflag [#allocation9], %s200_s26 }
  0x30   : > { %s4243_s30 = scalar_lea.hbm %s5002_s3, %s3599_s23  ;;  %s251_s10 = sshll.u32 %s244_s8, 4  ;;  %s4247_s10 = int_to_ptr.vmem [resolvable:$true] %s251_s10 }
  0x31   : > { %s3909_s7 = scalar_lea.hbm %s4243_s30, 6144  ;;  %s3914_s27 = scalar_lea.hbm %s5002_s3, 18432 }
  0x32   : > { %p3910_p9 = scmp.ne.s32.totalorder %s4243_s30, %s3909_s7  ;;  %p3915_p0 = scmp.lt.u32.totalorder %s4243_s30, %s5002_s3 }
  0x33   : > { %p3916_p1 = scmp.lt.u32.totalorder %s3914_s27, %s3909_s7  ;;  %p3918_p3 = scmp.lt.u32.totalorder %s3909_s7, %s4243_s30 }
  0x34   : > { %p3912_p12 = pnand %p3910_p9, %p4206_p7 }
  0x35   : > { %p3917_p2 = por %p3916_p1, %p3915_p0 }
  0x36   : > { %p3913_p13 = pneg %p3912_p12 }
  0x37   : > { %p3919_p4 = por %p3918_p3, %p3917_p2 }
  0x39   : > { %p3920_p6 = pnand %p3919_p4, %p3913_p13 }
  0x3b   : > { %3923 = shalt.err (!%p3920_p6)
}
  0x3c   : > { %s3924_s26 = scalar_lea.vmem %s4247_s10, 6144  ;;  %s4102_s11 = smov [#allocation8]  }
  0x3d   : > { %p3925_p8 = scmp.ne.s32.totalorder %s4247_s10, %s3924_s26  ;;  %s3929_s28 = sshll.u32 %s4102_s11, 4  ;;  %s3930_s28 = int_to_ptr.vmem [resolvable:$false] %s3929_s28 }
  0x3e   : > { %s3931_s8 = scalar_lea.vmem %s3930_s28, 12288  ;;  %p3932_p9 = scmp.lt.s32.totalorder %s4247_s10, %s3930_s28 }
  0x3f   : > { %p3927_p10 = pnand %p3925_p8, %p4206_p7  ;;  %p3933_p12 = scmp.lt.s32.totalorder %s3931_s8, %s3924_s26 }
  0x41   : > { %p3928_p11 = pneg %p3927_p10  ;;  %p3934_p0 = por %p3933_p12, %p3932_p9 }
  0x43   : > { %p3935_p1 = pnand %p3934_p0, %p3928_p11 }
  0x45   : > { %3938 = shalt.err (!%p3935_p1)
}
  0x46   : > { %s5005_s7 = smov 384   ;;  %s5006_s9 = smov 24  }
  0x47   : > { %3633 = dma.hbm_to_vmem [thread:$0]  (!%p4185_p5), %s4243_s30, 6144, %s4247_s10, %s4251_s6, %s5005_s7, %s5005_s7, %s5006_s9  }
  0x48   : > { %s4279_s13 = sadd.s32 4294967295, %s4099_s21   ;;  %p64_p13 = scmp.ne.s32.totalorder %s4091_s19, %s4087_s18 }
  0x49   : > { %p5007_p2 = scmp.eq.s32.totalorder %s4279_s13, 0  ;;  %p2954_p3 = scmp.ge.s32.totalorder %s4099_s21, 1 }
  0x4a   : > { %p174_p4 = scmp.lt.s32.totalorder %s4099_s21, 4  ;;  %s4105_s30 = smov [#allocation2]  }
  0x4b   : > { %p4289_p8 = por %p5007_p2, %p64_p13  ;;  %s186_s10 = sshll.u32 %s4105_s30, 4  ;;  %s4297_s10 = int_to_ptr.vmem [resolvable:$true] %s186_s10 }
  0x4c   : > { %p4293_p10 = pnand %p2954_p3, %p174_p4  ;;  %s4306_s26 = scalar_lea.hbm %s5001_s2, %s3599_s23 }
  0x4d   : > { %s5018_s27 = scalar_select %p4289_p8, 1, 0 }
  0x4e   : > { %s5019_s16 = scalar_select %p4293_p10, 1, 0 }
  0x4f   : > { %p3620_p11 = pneg %p4293_p10  ;;  %s3019_s11 = sshll.u32 %s4099_s21, 12 }
  0x50   : > { %s4318_s7 = scalar_lea.hbm %s5003_s4, %s3019_s11  ;;  %s3939_s9 = scalar_lea.hbm %s4306_s26, 6144 }
  0x51   : > { %p4311_p9 = pnand %p3620_p11, %p5007_p2  ;;  %p3940_p12 = scmp.ne.s32.totalorder %s4306_s26, %s3939_s9 }
  0x52   : > { %s3944_s24 = scalar_lea.hbm %s5001_s2, 18432  ;;  %p3945_p13 = scmp.lt.u32.totalorder %s4306_s26, %s5001_s2 }
  0x53   : > { %s5020_s28 = scalar_select %p4311_p9, 1, 0 }
  0x54   : > { %p3942_p0 = pnand %p3940_p12, %p4206_p7  ;;  %p3946_p3 = scmp.lt.u32.totalorder %s3944_s24, %s3939_s9 }
  0x55   : > { %p3948_p11 = scmp.lt.u32.totalorder %s3939_s9, %s4306_s26 }
  0x56   : > { %p3943_p1 = pneg %p3942_p0  ;;  %p3947_p4 = por %p3946_p3, %p3945_p13 }
  0x58   : > { %p3949_p6 = por %p3948_p11, %p3947_p4 }
  0x5a   : > { %p3950_p2 = pnand %p3949_p6, %p3943_p1 }
  0x5c   : > { %3953 = shalt.err (!%p3950_p2)
}
  0x5d   : > { %s3954_s11 = scalar_lea.vmem %s4233_s15, 6144  ;;  %s4106_s8 = smov [#allocation7]  }
  0x5e   : > { %p3955_p12 = scmp.ne.s32.totalorder %s4233_s15, %s3954_s11  ;;  %s3959_s30 = sshll.u32 %s4106_s8, 4  ;;  %s3960_s30 = int_to_ptr.vmem [resolvable:$false] %s3959_s30 }
  0x5f   : > { %s3961_s1 = scalar_lea.vmem %s3960_s30, 12288  ;;  %p3962_p10 = scmp.lt.s32.totalorder %s4233_s15, %s3960_s30 }
  0x60   : > { %p3957_p0 = pnand %p3955_p12, %p4206_p7  ;;  %p3963_p9 = scmp.lt.s32.totalorder %s3961_s1, %s3954_s11 }
  0x62   : > { %p3958_p8 = pneg %p3957_p0  ;;  %p3964_p13 = por %p3963_p9, %p3962_p10 }
  0x64   : > { %p3965_p3 = pnand %p3964_p13, %p3958_p8 }
  0x66   : > { %3968 = shalt.err (!%p3965_p3)
}
  0x67   : > { %s5021_s9 = smov 24   ;;  %s5022_s23 = smov 384  }
  0x68   : > { %3630 = dma.hbm_to_vmem [thread:$0]  (!%p4185_p5), %s4306_s26, 6144, %s4233_s15, %s4200_s12, %s5022_s23, %s5022_s23, %s5021_s9  }
  0x69   : > { %s3969_s21 = scalar_lea.hbm %s4999_s0, 512  ;;  %p5023_p6 = scmp.ne.s32.totalorder %s5020_s28, 0 }
  0x6a   : > { %p3970_p2 = scmp.ne.s32.totalorder %s4999_s0, %s3969_s21  ;;  %p3976_p1 = scmp.lt.u32.totalorder %s3969_s21, %s4999_s0 }
  0x6b   : > { %p3971_p8 = pneg %p5023_p6 }
  0x6d   : > { %p3972_p10 = pnand %p3971_p8, %p3970_p2 }
  0x6f   : > { %p3973_p9 = pneg %p3972_p10 }
  0x71   : > { %p3978_p4 = pnand %p3976_p1, %p3973_p9 }
  0x73   : > { %3981 = shalt.err (!%p3978_p4)
}
  0x74   : > { %s3982_s12 = scalar_lea.vmem %s4297_s10, 512  ;;  %p3990_p13 = scmp.lt.s32.totalorder %s4297_s10, %s4297_s10 }
  0x75   : > { %p3983_p11 = scmp.ne.s32.totalorder %s4297_s10, %s3982_s12  ;;  %p3991_p3 = scmp.lt.s32.totalorder %s3982_s12, %s3982_s12 }
  0x77   : > { %p3985_p12 = pnand %p3983_p11, %p3971_p8  ;;  %p3992_p5 = por %p3991_p3, %p3990_p13 }
  0x79   : > { %p3986_p0 = pneg %p3985_p12 }
  0x7b   : > { %p3993_p7 = pnand %p3992_p5, %p3986_p0 }
  0x7d   : > { %3996 = shalt.err (!%p3993_p7)
}
  0x7e   : > { %s4107_s15 = smov 128   ;;  %s4108_s26 = smov 8  }
  0x7f   : > { %3623 = dma.hbm_to_vmem [thread:$0]  (!%p5023_p6), %s4999_s0, 512, %s4297_s10, [#allocation3], %s4107_s15, %s4107_s15, %s4108_s26  }
  0x80   : > { %s3997_s18 = scalar_lea.hbm %s4318_s7, 4096  ;;  %p5024_p7 = scmp.ne.s32.totalorder %s5017_s14, 0 }
  0x81   : > { %p3998_p5 = scmp.ne.s32.totalorder %s4318_s7, %s3997_s18  ;;  %s4002_s8 = scalar_lea.hbm %s5003_s4, 12288 }
  0x82   : > { %p4003_p10 = scmp.lt.u32.totalorder %s4318_s7, %s5003_s4  ;;  %p4004_p9 = scmp.lt.u32.totalorder %s4002_s8, %s3997_s18 }
  0x83   : > { %p4000_p2 = pnand %p3998_p5, %p5024_p7  ;;  %p4006_p4 = scmp.lt.u32.totalorder %s3997_s18, %s4318_s7 }
  0x84   : > { %p4005_p1 = por %p4004_p9, %p4003_p10 }
  0x85   : > { %p4001_p8 = pneg %p4000_p2 }
  0x86   : > { %p4007_p11 = por %p4006_p4, %p4005_p1 }
  0x88   : > { %p4008_p12 = pnand %p4007_p11, %p4001_p8 }
  0x8a   : > { %4011 = shalt.err (!%p4008_p12)
}
  0x8b   : > { %s4012_s10 = scalar_lea.vmem %s4235_s17, 4096  ;;  %s4109_s28 = smov [#allocation10]  }
  0x8c   : > { %p4013_p6 = scmp.ne.s32.totalorder %s4235_s17, %s4012_s10  ;;  %s4017_s1 = sshll.u32 %s4109_s28, 4  ;;  %s4018_s1 = int_to_ptr.vmem [resolvable:$false] %s4017_s1 }
  0x8d   : > { %s4019_s12 = scalar_lea.vmem %s4018_s1, 8192  ;;  %p4020_p3 = scmp.lt.s32.totalorder %s4235_s17, %s4018_s1 }
  0x8e   : > { %p4015_p0 = pnand %p4013_p6, %p5024_p7  ;;  %p4021_p5 = scmp.lt.s32.totalorder %s4019_s12, %s4012_s10 }
  0x90   : > { %p4016_p13 = pneg %p4015_p0  ;;  %p4022_p2 = por %p4021_p5, %p4020_p3 }
  0x92   : > { %p4023_p10 = pnand %p4022_p2, %p4016_p13 }
  0x94   : > { %4026 = shalt.err (!%p4023_p10)
}
  0x95   : > { %p5025_p8 = scmp.ne.s32.totalorder %s5015_s29, 0  ;;  %p5026_p7 = scmp.ne.s32.totalorder %s5019_s16, 0 }
  0x96   : > { %p5027_p9 = scmp.eq.s32.totalorder (!%p5026_p7), %s4279_s13, 0 }
  0x97   : > { %3636 = dma.hbm_to_vmem [thread:$0]  (!%p5025_p8), %s4318_s7, 4096, %s4235_s17, %s4251_s6, %s4107_s15, %s4107_s15, %s4108_s26  }
  0x98   : > { %284 = sbr.rel (%p5026_p7) target bundleno = 3350 (0xd16), region = 40 }
  0x9f   : > { %4070 = dma.done.wait (%p5027_p9), [#allocation3], 512   ;;  %p5028_p1 = pmov %p5027_p9 }
  0xa0   : > { %s290_s29 = sand.u32 1, %s4279_s13   ;;  %s292_s14 = sand.u32 1, %s4091_s19  }
  0xa1   : > { %4072 = vsyncadd (%p5028_p1), [#allocation3], 4294966784  ;;  %s3602_s9 = smul.u32 24, %s292_s14  ;;  %s291_s23 = scalar_lea.sflag [#allocation6], %s290_s29 }
  0xa2   : > { %p5029_p4 = scmp.ne.s32.totalorder %s5018_s27, 0 }
  0xa3   : > { %s4402_s18 = scalar_lea.vmem [#allocation5], %s3602_s9 }
  0xa4   : > { %4074 = dma.done.wait (%p5029_p4), %s291_s23, 6528  }
  0xa5   : > { %4076 = vsyncadd (%p5029_p4), %s291_s23, 4294960768  ;;  %s3603_s17 = smul.u32 384, %s292_s14  ;;  %s309_s7 = scalar_lea.sflag [#allocation9], %s290_s29 }
  0xa7   : > { %s4408_s6 = scalar_lea.vmem [#allocation7], %s3603_s17  ;;  %s4410_s16 = scalar_lea.vmem [#allocation8], %s3603_s17 }
  0xa8   : > { %4078 = dma.done.wait (%p5029_p4), %s309_s7, 10240  }
  0xa9   : > { %4080 = vsyncadd (%p5029_p4), %s309_s7, 4294957056  ;;  %s2965_s15 = sshll.u32 %s292_s14, 8  ;;  %p5030_p11 = scmp.ne.s32.totalorder %s4279_s13, 0 }
  0xaa   : > { %s4416_s26 = scalar_lea.vmem [#allocation10], %s2965_s15  ;;  %v362_v0 = vld [vmem:[#allocation2] sm:$0xff] (!%p5030_p11)  ;;  %v363_v1 = vld [vmem:[#allocation2 + $0x8] sm:$0xff] (!%p5030_p11)  ;;  %v364_v2 = vld [vmem:[#allocation2 + $0x10] sm:$0xff] (!%p5030_p11) }
  0xab   : > { %361 = sbr.rel (%p5030_p11) target bundleno = 178 (0xb2), region = 64  ;;  %366 = vst [vmem:[#allocation11] sm:$0xff] (!%p5030_p11), %v362_v0  ;;  %367 = vst [vmem:[#allocation11 + $0x8] sm:$0xff] (!%p5030_p11), %v363_v1  ;;  %v365_v3 = vld [vmem:[#allocation2 + $0x18] sm:$0xff] (!%p5030_p11) }
  0xac   : > { %368 = vst [vmem:[#allocation11 + $0x10] sm:$0xff] (!%p5030_p11), %v364_v2  ;;  %369 = vst [vmem:[#allocation11 + $0x18] sm:$0xff] (!%p5030_p11), %v365_v3 }
  0xb2 PF: > { %v370_v4 = vld [vmem:[#allocation11] sm:$0xff]  ;;  %v371_v5 = vld [vmem:[#allocation11 + $0x8] sm:$0xff]  ;;  %v380_v11 = vld [vmem:[%s4408_s6 + $0x18] sm:$0xff]  ;;  %vm848_vm0 = vcmask 261120   ;;  %s4111_s27 = smov 96   ;;  %s4112_s24 = smov 32  }
  0xb3   : > { %505 = vadd.xlane.f32.xlu0 %v370_v4  ;;  %v4420_v6 = vld [vmem:[#allocation11 + $0x10] sm:$0xff]  ;;  %v378_v7 = vld [vmem:[%s4408_s6 + $0x8] sm:$0xff]  ;;  %v381_v8 = vld [vmem:[%s4408_s6 + $0x20] sm:$0xff]  ;;  %s4113_s21 = smov 64   ;;  %vm1181_vm2 = vcmask 130048   ;;  %vm2390_vm3 = vcmask 523264  }
  0xb4   : > { %v377_v9 = vld [vmem:[%s4408_s6] sm:$0xff]  ;;  %v3356_v10 = vpack.c.bf16 %v381_v8, %v378_v7  ;;  %v384_v12 = vld [vmem:[%s4408_s6 + $0x38] sm:$0xff]  ;;  %v387_v13 = vld [vmem:[%s4408_s6 + $0x50] sm:$0xff]  ;;  %vm2395_vm4 = vcmask 785408   ;;  %s4114_s8 = smov [#allocation11]   ;;  %p3640_p12 = scmp.eq.s32.totalorder %s4279_s13, 2 }
  0xb5   : > { %v3358_v14 = vpack.c.bf16 %v380_v11, %v377_v9  ;;  %v3360_v15 = vpack.c.bf16 %v387_v13, %v384_v12  ;;  %v379_v16 = vld [vmem:[%s4408_s6 + $0x10] sm:$0xff]  ;;  %v382_v17 = vld [vmem:[%s4408_s6 + $0x28] sm:$0xff]  ;;  %v393_v22 = vld [vmem:[%s4408_s6 + $0x80] sm:$0xff]  ;;  %v4110_v11 = vmov 0.0   ;;  %s2825_s30 = sshll.u32 %s4114_s8, 4  ;;  %s2826_s30 = int_to_ptr.vmem [resolvable:$true] %s2825_s30 }
  0xb6   : > { %v383_v18 = vld [vmem:[%s4408_s6 + $0x30] sm:$0xff]  ;;  %3357 = vmatprep.subr.bf16.mxu0 %v3356_v10  ;;  %v3388_v19 = vpack.c.bf16 %v382_v17, %v379_v16  ;;  %v386_v20 = vld [vmem:[%s4408_s6 + $0x48] sm:$0xff]  ;;  %v385_v24 = vld [vmem:[%s4408_s6 + $0x40] sm:$0xff]  ;;  %642 = vmatprep.mubr.f32.mxu0 %v4110_v11  ;;  %s4027_s11 = scalar_lea.vmem %s2826_s30, 512  ;;  %p4034_p3 = scmp.lt.s32.totalorder %s2826_s30, %s2826_s30 }
  0xb7   : > { %507 = vadd.xlane.f32.xlu0 %v371_v5  ;;  %v390_v21 = vld [vmem:[%s4408_s6 + $0x68] sm:$0xff]  ;;  %3359 = vmatpush1.bf16.msra.mxu0 %v3358_v14  ;;  %v3362_v23 = vpack.c.bf16 %v386_v20, %v383_v18  ;;  %v388_v25 = vld [vmem:[%s4408_s6 + $0x58] sm:$0xff]  ;;  %v389_v28 = vld [vmem:[%s4408_s6 + $0x60] sm:$0xff]  ;;  %p4028_p6 = scmp.ne.s32.totalorder %s2826_s30, %s4027_s11  ;;  %p4035_p5 = scmp.lt.s32.totalorder %s4027_s11, %s4027_s11 }
  0xb8   : > { %3361 = vmatprep.subr.bf16.mxu0 %v3360_v15  ;;  %3389 = vmatprep.subr.bf16.mxu1 %v3388_v19  ;;  %v3364_v26 = vpack.c.bf16 %v393_v22, %v390_v21  ;;  %v3392_v27 = vpack.c.bf16 %v388_v25, %v385_v24  ;;  %v392_v29 = vld [vmem:[%s4408_s6 + $0x78] sm:$0xff]  ;;  %v399_v41 = vld [vmem:[%s4408_s6 + $0xb0] sm:$0xff]  ;;  %v394_v44 = vld [vmem:[%s4408_s6 + $0x88] sm:$0xff] }
  0xb9   : > { %3391 = vmatpush3.bf16.msra.mxu1 %v3388_v19  ;;  %v3366_v30 = vpack.c.bf16 %v392_v29, %v389_v28  ;;  %v4447_v39 = vld [vmem:[#allocation11 + $0x18] sm:$0xff]  ;;  %v391_v42 = vld [vmem:[%s4408_s6 + $0x70] sm:$0xff]  ;;  %v398_v46 = vld [vmem:[%s4408_s6 + $0xa8] sm:$0xff]  ;;  %p4029_p0 = pnand %p4028_p6, %p3640_p12  ;;  %p4036_p2 = por %p4035_p5, %p4034_p3 }
  0xba   : > { %3393 = vmatprep.subr.bf16.mxu1 %v3392_v27  ;;  %v396_v40 = vld [vmem:[%s4408_s6 + $0x98] sm:$0xff]  ;;  %v395_v45 = vld [vmem:[%s4408_s6 + $0x90] sm:$0xff]  ;;  %v3396_v47 = vpack.c.bf16 %v394_v44, %v391_v42  ;;  %v402_v49 = vld [vmem:[%s4408_s6 + $0xc8] sm:$0xff] }
  0xbb   : > { %509 = vadd.xlane.f32.xlu0 %v4420_v6  ;;  %3363 = vmatpush1.bf16.msra.mxu0 %v3362_v23  ;;  %v3368_v43 = vpack.c.bf16 %v399_v41, %v396_v40  ;;  %v3370_v48 = vpack.c.bf16 %v398_v46, %v395_v45  ;;  %v405_v50 = vld [vmem:[%s4408_s6 + $0xe0] sm:$0xff]  ;;  %v400_v53 = vld [vmem:[%s4408_s6 + $0xb8] sm:$0xff]  ;;  %v411_v59 = vld [vmem:[%s4408_s6 + $0x110] sm:$0xff]  ;;  %p4030_p13 = pneg %p4029_p0 }
  0xbc   : > { %3365 = vmatprep.subr.bf16.mxu0 %v3364_v26  ;;  %v397_v51 = vld [vmem:[%s4408_s6 + $0xa0] sm:$0xff]  ;;  %v3372_v52 = vpack.c.bf16 %v405_v50, %v402_v49  ;;  %v404_v55 = vld [vmem:[%s4408_s6 + $0xd8] sm:$0xff]  ;;  %v403_v60 = vld [vmem:[%s4408_s6 + $0xd0] sm:$0xff] }
  0xbd   : > { %3395 = vmatpush3.bf16.msra.mxu1 %v3392_v27  ;;  %v401_v54 = vld [vmem:[%s4408_s6 + $0xc0] sm:$0xff]  ;;  %v3400_v56 = vpack.c.bf16 %v400_v53, %v397_v51  ;;  %v408_v58 = vld [vmem:[%s4408_s6 + $0xf8] sm:$0xff]  ;;  %v406_v62 = vld [vmem:[%s4408_s6 + $0xe8] sm:$0xff]  ;;  %p4037_p10 = pnand %p4036_p2, %p4030_p13 }
  0xbe   : > { %3397 = vmatprep.subr.bf16.mxu1 %v3396_v47  ;;  %v3374_v57 = vpack.c.bf16 %v404_v55, %v401_v54  ;;  %v3376_v61 = vpack.c.bf16 %v411_v59, %v408_v58  ;;  %v407_v63 = vld [vmem:[%s4408_s6 + $0xf0] sm:$0xff]  ;;  %v410_v0 = vld [vmem:[%s4408_s6 + $0x108] sm:$0xff]  ;;  %v3404_v1 = vpack.c.bf16 %v406_v62, %v403_v60  ;;  %v412_v8 = vld [vmem:[%s4408_s6 + $0x118] sm:$0xff] }
  0xbf   : > { %3367 = vmatpush1.bf16.msra.mxu0 %v3366_v30  ;;  %v3378_v2 = vpack.c.bf16 %v410_v0, %v407_v63  ;;  %v414_v3 = vld [vmem:[%s4408_s6 + $0x128] sm:$0xff]  ;;  %v413_v9 = vld [vmem:[%s4408_s6 + $0x120] sm:$0xff]  ;;  %v416_v10 = vld [vmem:[%s4408_s6 + $0x138] sm:$0xff] }
  0xc0   : > { %3369 = vmatprep.subr.bf16.mxu0 %v3368_v43  ;;  %v3382_v13 = vpack.c.bf16 %v416_v10, %v413_v9  ;;  %v420_v14 = vld [vmem:[%s4408_s6 + $0x158] sm:$0xff]  ;;  %v423_v15 = vld [vmem:[%s4408_s6 + $0x170] sm:$0xff]  ;;  %v418_v18 = vld [vmem:[%s4408_s6 + $0x148] sm:$0xff] }
  0xc1   : > { %3399 = vmatpush3.bf16.msra.mxu1 %v3396_v47  ;;  %v415_v16 = vld [vmem:[%s4408_s6 + $0x130] sm:$0xff]  ;;  %v3384_v17 = vpack.c.bf16 %v423_v15, %v420_v14  ;;  %v422_v20 = vld [vmem:[%s4408_s6 + $0x168] sm:$0xff]  ;;  %v421_v23 = vld [vmem:[%s4408_s6 + $0x160] sm:$0xff] }
  0xc2   : > { %3401 = vmatprep.subr.bf16.mxu1 %v3400_v56  ;;  %v419_v19 = vld [vmem:[%s4408_s6 + $0x150] sm:$0xff]  ;;  %v3412_v21 = vpack.c.bf16 %v418_v18, %v415_v16  ;;  %v424_v24 = vld [vmem:[%s4408_s6 + $0x178] sm:$0xff]  ;;  %vm4519_vm1 = vmpackc.low %vm848_vm0, %vm848_vm0 }
  0xc3   : > { %3371 = vmatpush1.bf16.msra.mxu0 %v3370_v48  ;;  %v3386_v22 = vpack.c.bf16 %v422_v20, %v419_v19  ;;  %v3416_v25 = vpack.c.bf16 %v424_v24, %v421_v23  ;;  %v375_v45 = vld [vmem:[%s4402_s18 + $0x8] sm:$0xff] }
  0xc4   : > { %3373 = vmatprep.subr.bf16.mxu0 %v3372_v52 }
  0xc5   : > { %3403 = vmatpush3.bf16.msra.mxu1 %v3400_v56 }
  0xc6   : > { %3405 = vmatprep.subr.bf16.mxu1 %v3404_v1 }
  0xc7   : > { %3375 = vmatpush1.bf16.msra.mxu0 %v3374_v57 }
  0xc8   : > { %3377 = vmatprep.subr.bf16.mxu0 %v3376_v61 }
  0xc9   : > { %3407 = vmatpush3.bf16.msra.mxu1 %v3404_v1 }
  0xcb   : > { %3379 = vmatpush1.bf16.msra.mxu0 %v3378_v2 }
 0x140   : > { %v506_v31 = vpop.xlane.xlu0 %505 }
 0x141   : > { %v514_v32 = vmul.f32 0.0078125, %v506_v31 }
 0x143   : > { %v4439_v33 = vsub.f32 %v370_v4, %v514_v32  ;;  %v417_v4 = vld [vmem:[%s4408_s6 + $0x140] sm:$0xff]  ;;  %v550_v32 = vlaneseq }
 0x144   : > { %v508_v34 = vpop.xlane.xlu0 %507  ;;  %v3380_v7 = vpack.c.bf16 %v417_v4, %v414_v3 }
 0x145   : > { %v515_v35 = vmul.f32 0.0078125, %v508_v34  ;;  %v522_v36 = vmul.f32 %v4439_v33, %v4439_v33 }
 0x146   : > { %3381 = vmatprep.subr.bf16.mxu0 %v3380_v7  ;;  %v4503_v7 = vld [vmem:[%s4402_s18 + $0x10] sm:$0xff] }
 0x147   : > { %v4443_v37 = vsub.f32 %v371_v5, %v515_v35  ;;  %526 = vadd.xlane.f32.xlu1 %v522_v36  ;;  %v409_v5 = vld [vmem:[%s4408_s6 + $0x100] sm:$0xff]  ;;  %3383 = vmatpush1.bf16.msra.mxu0 %v3382_v13 }
 0x148   : > { %v3408_v12 = vpack.c.bf16 %v412_v8, %v409_v5  ;;  %3385 = vmatprep.subr.bf16.mxu0 %v3384_v17  ;;  %v510_v26 = vpop.xlane.xlu0 %509 }
 0x149   : > { %v523_v38 = vmul.f32 %v4443_v37, %v4443_v37  ;;  %v516_v27 = vmul.f32 0.0078125, %v510_v26 }
 0x14a   : > { %3409 = vmatprep.subr.bf16.mxu1 %v3408_v12 }
 0x14b   : > { %528 = vadd.xlane.f32.xlu1 %v523_v38  ;;  %3411 = vmatpush3.bf16.msra.mxu1 %v3408_v12  ;;  %v520_v28 = vsub.f32 %v4420_v6, %v516_v27  ;;  %v4484_v38 = vshrl.u32 %v550_v32, 7  ;;  %v374_v6 = vld [vmem:[%s4402_s18] sm:$0xff] }
 0x14c   : > { %3413 = vmatprep.subr.bf16.mxu1 %v3412_v21  ;;  %3387 = vmatpush1.bf16.msra.mxu0 %v3386_v22 }
 0x14d   : > { %v524_v29 = vmul.f32 %v520_v28, %v520_v28  ;;  %v4487_v43 = vsub.s32 0, %v4484_v38  ;;  %v568_v4 = vsub.s32 2, %v4484_v38 }
 0x14f   : > { %511 = vadd.xlane.f32.xlu1 %v4447_v39  ;;  %3415 = vmatpush3.bf16.msra.mxu1 %v3412_v21  ;;  %v553_v47 = vrot.slane %v374_v6, %v4487_v43  ;;  %v561_v50 = vrot.slane %v375_v45, %v4487_v43  ;;  %v4500_v5 = vrot.slane %v374_v6, %v568_v4 }
 0x150   : > { %3417 = vmatprep.subr.bf16.mxu1 %v3416_v25  ;;  %530 = vadd.xlane.f32.xlu0 %v524_v29  ;;  %v4507_v12 = vrot.slane %v4503_v7, %v568_v4  ;;  %v4509_v13 = vrot.slane %v375_v45, %v568_v4 }
 0x153   : > { %3419 = vmatpush3.bf16.msra.mxu1 %v3416_v25 }
 0x1d4   : > { %v527_v30 = vpop.xlane.xlu1 %526 }
 0x1d5   : > { %v534_v31 = vmul.f32 0.0078125, %v527_v30 }
 0x1d7   : > { %v538_v34 = vadd.f32 1e-06, %v534_v31 }
 0x1d8   : > { %v529_v35 = vpop.xlane.xlu1 %528 }
 0x1d9   : > { %3776 = vrsqrt.f32 %v538_v34  ;;  %v535_v36 = vmul.f32 0.0078125, %v529_v35 }
 0x1db   : > { %v539_v40 = vadd.f32 1e-06, %v535_v36 }
 0x1dc   : > { %v512_v41 = vpop.xlane.xlu1 %511 }
 0x1dd   : > { %3778 = vrsqrt.f32 %v539_v40  ;;  %v517_v42 = vmul.f32 0.0078125, %v512_v41  ;;  %v531_v56 = vpop.xlane.xlu0 %530 }
 0x1de   : > { %v536_v57 = vmul.f32 0.0078125, %v531_v56 }
 0x1df   : > { %v521_v44 = vsub.f32 %v4447_v39, %v517_v42 }
 0x1e1   : > { %v525_v46 = vmul.f32 %v521_v44, %v521_v44 }
 0x1e3   : > { %v3777_v48 = vpop.eup %3776  ;;  %532 = vadd.xlane.f32.xlu1 %v525_v46 }
 0x1e4   : > { %v546_v49 = vmul.f32 %v3777_v48, %v4439_v33  ;;  %v540_v33 = vadd.f32 1e-06, %v536_v57 }
 0x1e6   : > { %v554_v51 = vmul.f32 %v553_v47, %v546_v49  ;;  %3780 = vrsqrt.f32 %v540_v33 }
 0x1e7   : > { %v3779_v52 = vpop.eup %3778 }
 0x1e8   : > { %v562_v53 = vadd.f32 %v561_v50, %v554_v51  ;;  %v547_v54 = vmul.f32 %v3779_v52, %v4443_v37 }
 0x1ea   : > { %643 = vmatmul.mubr.f32.vlgmr.msra.gmra.mrb[0].mxu0 %v562_v53  ;;  %3200 = vmatprep.mubr.f32.mxu1 %v562_v53  ;;  %v555_v55 = vmul.f32 %v553_v47, %v547_v54 }
 0x1eb   : > { %648 = vmatprep.mubr.f32.mxu0 %v4110_v11 }
 0x1ec   : > { %v563_v39 = vadd.f32 %v561_v50, %v555_v55 }
 0x1ee   : > { %649 = vmatmul.mubr.f32.gmra.mrb[2].mxu0 %v563_v39  ;;  %3201 = vmatmul.mubr.f32.vlgmr.msra.gmra.mrb[0].mxu1 %v563_v39 }
 0x1ef   : > { %654 = vmatprep.mubr.f32.mxu0 %v4110_v11 }
 0x1f0   : > { %v3781_v58 = vpop.eup %3780 }
 0x1f1   : > { %v548_v59 = vmul.f32 %v3781_v58, %v520_v28 }
 0x1f3   : > { %v556_v60 = vmul.f32 %v553_v47, %v548_v59 }
 0x1f5   : > { %v564_v61 = vadd.f32 %v561_v50, %v556_v60 }
 0x1f7   : > { %655 = vmatmul.mubr.f32.gmra.mrb[4].mxu0 %v564_v61  ;;  %3203 = vmatprep.mubr.f32.mxu1 %v564_v61 }
 0x1f8   : > { %660 = vmatprep.mubr.f32.mxu0 %v4110_v11 }
 0x270   : > { %v533_v37 = vpop.xlane.xlu1 %532 }
 0x271   : > { %v537_v62 = vmul.f32 0.0078125, %v533_v37 }
 0x273   : > { %v541_v63 = vadd.f32 1e-06, %v537_v62 }
 0x275   : > { %3782 = vrsqrt.f32 %v541_v63 }
 0x27f   : > { %v3783_v0 = vpop.eup %3782 }
 0x280   : > { %v549_v1 = vmul.f32 %v3783_v0, %v521_v44 }
 0x282   : > { %v557_v2 = vmul.f32 %v553_v47, %v549_v1 }
 0x284   : > { %v565_v3 = vadd.f32 %v561_v50, %v557_v2 }
 0x286   : > { %661 = vmatmul.mubr.f32.gmra.mrb[6].mxu0 %v565_v3  ;;  %3204 = vmatmul.mubr.f32.gmra.mrb[2].mxu1 %v565_v3 }
 0x2bd   : > { %v644_v8 = vpop.f32.mrb[0].mxu0 }
 0x2be   : > { %v645_v9 = vadd.f32 %v644_v8, %v4500_v5  ;;  %v646_v10 = vpop.f32.mrb[1].mxu0 }
 0x2bf   : > { %v647_v19 = vadd.f32 %v646_v10, %v4509_v13 }
 0x2c0   : > { %756 = vrot.lane.b32.xlu1 %v645_v9, %s4111_s27  ;;  %3210 = vmatprep.mubr.msk.f32.mxu1 %vm848_vm0, %v645_v9 }
 0x2c1   : > { %v650_v14 = vpop.f32.mrb[2].mxu0  ;;  %v3202_v15 = vpop.f32.mrb[0].mxu1 }
 0x2c2   : > { %v739_v16 = vadd.f32 %v3202_v15, %v4507_v12  ;;  %v652_v17 = vpop.f32.mrb[3].mxu0  ;;  %v733_v18 = vpop.f32.mrb[1].mxu1  ;;  %v651_v27 = vadd.f32 %v650_v14, %v4500_v5 }
 0x2c3   : > { %v653_v20 = vadd.f32 %v652_v17, %v4509_v13  ;;  %v734_v21 = vadd.f32 %v733_v18, %v4507_v12 }
 0x2c5   : > { %v3420_v23 = vpack.c.bf16 %v653_v20, %v647_v19  ;;  %v3691_v24 = vpack.i.bf16 %v653_v20, %v647_v19  ;;  %v3444_v25 = vpack.c.bf16 %v739_v16, %v734_v21  ;;  %v4523_v26 = vpack.i.bf16 %v739_v16, %v734_v21 }
 0x2c7   : > { %3422 = vmatprep.subr.msk.bf16.mxu1 %vm4519_vm1, %v3420_v23  ;;  %3692 = vrot.lane.b32.xlu1 %v3691_v24, %s4112_s24 }
 0x2c8   : > { %3687 = vrot.lane.b32.xlu0 %v3691_v24, %s4111_s27  ;;  %3425 = vmatpush3.bf16.xpose.msk.msra.mxu1 %vm4519_vm1, %v3420_v23 }
 0x2ca   : > { %v4539_v28 = vpop.f32.mrb[4].mxu0 }
 0x2cb   : > { %758 = vrot.lane.b32.xlu1 %v651_v27, %s4111_s27  ;;  %v658_v29 = vpop.f32.mrb[5].mxu0 }
 0x2cc   : > { %772 = vrot.lane.b32.xlu0 %v645_v9, %s4112_s24  ;;  %v659_v52 = vadd.f32 %v658_v29, %v4509_v13 }
 0x2cf   : > { %774 = vrot.lane.b32.xlu1 %v651_v27, %s4112_s24  ;;  %3211 = vmatmul.mubr.msk.f32.vlgmr.msra.gmra.mrb[4].mxu1 %vm848_vm0, %v651_v27 }
 0x2d0   : > { %3697 = vrot.lane.b32.xlu0 %v3691_v24, %s4113_s21 }
 0x2d3   : > { %764 = vrot.lane.b32.xlu1 %v645_v9, %s4113_s21 }
 0x2d4   : > { %766 = vrot.lane.b32.xlu0 %v651_v27, %s4113_s21 }
 0x332   : > { %v757_v30 = vpop.permute.xlu1 %756 }
 0x333   : > { %3217 = vmatprep.mubr.msk.f32.mxu1 %vm848_vm0, %v757_v30 }
 0x339   : > { %v3693_v31 = vpop.permute.xlu1 %3692 }
 0x33a   : > { %v3695_v32 = vunpack.i.h.bf16 %v3693_v31  ;;  %v3694_v34 = vunpack.i.l.bf16 %v3693_v31  ;;  %v3688_v35 = vpop.permute.xlu0 %3687 }
 0x33b   : > { %v3690_v36 = vunpack.i.h.bf16 %v3688_v35  ;;  %v3689_v40 = vunpack.i.l.bf16 %v3688_v35 }
 0x33c   : > { %v3438_v41 = vpack.c.bf16 %v3695_v32, %v3694_v34 }
 0x33d   : > { %v3426_v42 = vpack.c.bf16 %v3690_v36, %v3689_v40  ;;  %v759_v6 = vpop.permute.xlu1 %758 }
 0x33e   : > { %v773_v44 = vpop.permute.xlu0 %772  ;;  %3440 = vmatprep.subr.msk.bf16.mxu0 %vm4519_vm1, %v3438_v41 }
 0x33f   : > { %3428 = vmatprep.subr.msk.bf16.mxu1 %vm4519_vm1, %v3426_v42  ;;  %3231 = vmatprep.mubr.msk.f32.mxu0 %vm848_vm0, %v773_v44 }
 0x340   : > { %3431 = vmatpush3.bf16.xpose.msk.msra.mxu1 %vm4519_vm1, %v3426_v42  ;;  %3443 = vmatpush3.bf16.xpose.msk.msra.mxu0 %vm4519_vm1, %v3438_v41 }
 0x341   : > { %v775_v45 = vpop.permute.xlu1 %774 }
 0x342   : > { %v3698_v46 = vpop.permute.xlu0 %3697 }
 0x343   : > { %v3700_v47 = vunpack.i.h.bf16 %v3698_v46  ;;  %v3699_v48 = vunpack.i.l.bf16 %v3698_v46 }
 0x345   : > { %v3432_v49 = vpack.c.bf16 %v3700_v47, %v3699_v48  ;;  %v765_v50 = vpop.permute.xlu1 %764 }
 0x346   : > { %v767_v51 = vpop.permute.xlu0 %766 }
 0x347   : > { %3218 = vmatmul.mubr.msk.f32.vlgmr.msra.gmra.mrb[6].mxu1 %vm848_vm0, %v759_v6  ;;  %3434 = vmatprep.subr.msk.bf16.mxu1 %vm4519_vm1, %v3432_v49 }
 0x348   : > { %3232 = vmatmul.mubr.msk.f32.vlgmr.msra.gmra.mrb[8].mxu0 %vm848_vm0, %v775_v45  ;;  %3437 = vmatpush3.bf16.xpose.msk.msra.mxu1 %vm4519_vm1, %v3432_v49 }
 0x349   : > { %3224 = vmatprep.mubr.msk.f32.mxu1 %vm848_vm0, %v765_v50  ;;  %3445 = vmatprep.subr.bf16.mxu1 %v3444_v25 }
 0x34f   : > { %3225 = vmatmul.mubr.msk.f32.vlgmr.msra.gmra.mrb[8].mxu1 %vm848_vm0, %v767_v51 }
 0x350   : > { %3447 = vmatpush3.bf16.msra.mxu1 %v3444_v25 }
 0x359   : > { %v4560_v53 = vpop.f32.mrb[6].mxu0  ;;  %v3205_v54 = vpop.f32.mrb[2].mxu1 }
 0x35a   : > { %v664_v55 = vpop.f32.mrb[7].mxu0  ;;  %v749_v39 = vadd.f32 %v3205_v54, %v4507_v12  ;;  %v743_v56 = vpop.f32.mrb[3].mxu1 }
 0x35b   : > { %v665_v57 = vadd.f32 %v664_v55, %v4509_v13  ;;  %v744_v33 = vadd.f32 %v743_v56, %v4507_v12 }
 0x35d   : > { %v4565_v58 = vpack.i.bf16 %v665_v57, %v659_v52  ;;  %v4567_v59 = vpack.c.bf16 %v665_v57, %v659_v52  ;;  %v4569_v60 = vpack.c.bf16 %v749_v39, %v744_v33  ;;  %v4571_v61 = vpack.i.bf16 %v749_v39, %v744_v33 }
 0x3a2   : > { %v3212_v37 = vpop.f32.mrb[4].mxu1 }
 0x3a3   : > { %v923_v62 = vpop.f32.mrb[5].mxu1  ;;  %v1185_v63 = vsel %vm1181_vm2, %v3212_v37, -inf }
 0x3a4   : > { %1186 = vmax.xlane.f32.xlu0 %v1185_v63  ;;  %v1182_v0 = vsel %vm1181_vm2, %v923_v62, -inf }
 0x3a5   : > { %1183 = vmax.xlane.f32.xlu1 %v1182_v0 }
 0x41a   : > { %v3219_v1 = vpop.f32.mrb[6].mxu1 }
 0x41b   : > { %v3233_v2 = vpop.f32.mrb[8].mxu0  ;;  %v1006_v3 = vpop.f32.mrb[7].mxu1  ;;  %v1191_v10 = vsel %vm1181_vm2, %v3219_v1, -inf }
 0x41c   : > { %v1172_v4 = vpop.f32.mrb[9].mxu0  ;;  %v1188_v8 = vsel %vm1181_vm2, %v1006_v3, -inf  ;;  %v1203_v14 = vsel %vm1181_vm2, %v3233_v2, -inf }
 0x41d   : > { %v1200_v9 = vsel %vm1181_vm2, %v1172_v4, -inf  ;;  %1189 = vmax.xlane.f32.xlu0 %v1188_v8 }
 0x41e   : > { %1201 = vmax.xlane.f32.xlu1 %v1200_v9 }
 0x421   : > { %1192 = vmax.xlane.f32.xlu0 %v1191_v10 }
 0x422   : > { %v4578_v12 = vpop.f32.mrb[8].mxu1 }
 0x423   : > { %v4580_v13 = vpop.f32.mrb[9].mxu1  ;;  %v1197_v16 = vsel %vm1181_vm2, %v4578_v12, -inf }
 0x424   : > { %v1194_v15 = vsel %vm1181_vm2, %v4580_v13, -inf }
 0x425   : > { %1204 = vmax.xlane.f32.xlu0 %v1203_v14  ;;  %1195 = vmax.xlane.f32.xlu1 %v1194_v15 }
 0x429   : > { %1198 = vmax.xlane.f32.xlu0 %v1197_v16 }
 0x431   : > { %v1187_v17 = vpop.xlane.xlu0 %1186 }
 0x432   : > { %v1207_v18 = vsub.f32 %v3212_v37, %v1187_v17  ;;  %v1184_v19 = vpop.xlane.xlu1 %1183 }
 0x433   : > { %v1206_v20 = vsub.f32 %v923_v62, %v1184_v19 }
 0x434   : > { %v1216_v21 = vmul.f32 1.442695, %v1207_v18 }
 0x435   : > { %v1214_v23 = vmul.f32 1.442695, %v1206_v20 }
 0x436   : > { %3784 = vpow2.f32 %v1216_v21 }
 0x437   : > { %3786 = vpow2.f32 %v1214_v23 }
 0x440   : > { %v3785_v24 = vpop.eup %3784 }
 0x441   : > { %v3787_v25 = vpop.eup %3786  ;;  %v1233_v27 = vsel %vm1181_vm2, %v3785_v24, 0.0 }
 0x442   : > { %1234 = vadd.xlane.f32.xlu0 %v1233_v27  ;;  %v1230_v29 = vsel %vm1181_vm2, %v3787_v25, 0.0 }
 0x443   : > { %1231 = vadd.xlane.f32.xlu1 %v1230_v29 }
 0x4aa   : > { %v1190_v30 = vpop.xlane.xlu0 %1189 }
 0x4ab   : > { %v1202_v31 = vpop.xlane.xlu1 %1201  ;;  %v1208_v32 = vsub.f32 %v1006_v3, %v1190_v30 }
 0x4ac   : > { %v1212_v34 = vsub.f32 %v1172_v4, %v1202_v31 }
 0x4ad   : > { %v1218_v35 = vmul.f32 1.442695, %v1208_v32 }
 0x4ae   : > { %v1226_v36 = vmul.f32 1.442695, %v1212_v34  ;;  %v1193_v40 = vpop.xlane.xlu0 %1192 }
 0x4af   : > { %3788 = vpow2.f32 %v1218_v35  ;;  %v1209_v41 = vsub.f32 %v3219_v1, %v1193_v40 }
 0x4b0   : > { %3790 = vpow2.f32 %v1226_v36 }
 0x4b1   : > { %v1220_v42 = vmul.f32 1.442695, %v1209_v41 }
 0x4b2   : > { %v1205_v6 = vpop.xlane.xlu0 %1204  ;;  %v1196_v39 = vpop.xlane.xlu1 %1195 }
 0x4b3   : > { %3792 = vpow2.f32 %v1220_v42  ;;  %v1213_v44 = vsub.f32 %v3233_v2, %v1205_v6  ;;  %v4625_v2 = vadd.f32 %v4560_v53, %v4500_v5 }
 0x4b5   : > { %v1228_v45 = vmul.f32 1.442695, %v1213_v44 }
 0x4b6   : > { %v1199_v55 = vpop.xlane.xlu0 %1198 }
 0x4b7   : > { %3794 = vpow2.f32 %v1228_v45  ;;  %v1211_v0 = vsub.f32 %v4578_v12, %v1199_v55 }
 0x4b9   : > { %v4589_v46 = vpop.eup %3788  ;;  %v1224_v1 = vmul.f32 1.442695, %v1211_v0 }
 0x4ba   : > { %v1236_v47 = vsel %vm1181_vm2, %v4589_v46, 0.0  ;;  %v4593_v48 = vpop.eup %3790 }
 0x4bb   : > { %1237 = vadd.xlane.f32.xlu1 %v1236_v47  ;;  %v1248_v51 = vsel %vm1181_vm2, %v4593_v48, 0.0 }
 0x4bd   : > { %v4595_v49 = vpop.eup %3792 }
 0x4be   : > { %v1239_v50 = vsel %vm1181_vm2, %v4595_v49, 0.0 }
 0x4bf   : > { %1240 = vadd.xlane.f32.xlu0 %v1239_v50  ;;  %1249 = vadd.xlane.f32.xlu1 %v1248_v51 }
 0x4c1   : > { %v4601_v52 = vpop.eup %3794 }
 0x4c2   : > { %v1251_v54 = vsel %vm1181_vm2, %v4601_v52, 0.0 }
 0x4c3   : > { %1252 = vadd.xlane.f32.xlu0 %v1251_v54 }
 0x4cf   : > { %v1235_v56 = vpop.xlane.xlu0 %1234 }
 0x4d0   : > { %3796 = vrcp.f32 %v1235_v56  ;;  %3702 = vrot.lane.b32.xlu1 %v4523_v26, %s4111_s27  ;;  %v1232_v57 = vpop.xlane.xlu1 %1231 }
 0x4d1   : > { %3798 = vrcp.f32 %v1232_v57 }
 0x4d2   : > { %3800 = vpow2.f32 %v1224_v1 }
 0x4d9   : > { %3707 = vrot.lane.b32.xlu0 %v4523_v26, %s4112_s24 }
 0x4da   : > { %v3797_v33 = vpop.eup %3796 }
 0x4db   : > { %v3799_v37 = vpop.eup %3798  ;;  %v1257_v63 = vmul.f32 %v3797_v33, %v3785_v24 }
 0x4dc   : > { %v1255_v62 = vmul.f32 %v3799_v37, %v3787_v25  ;;  %v4627_v3 = vpop.eup %3800 }
 0x4dd   : > { %3712 = vrot.lane.b32.xlu0 %v4523_v26, %s4113_s21  ;;  %v657_v26 = vadd.f32 %v4539_v28, %v4500_v5  ;;  %v1245_v4 = vsel %vm1181_vm2, %v4627_v3, 0.0 }
 0x4de   : > { %3238 = vmatprep.mubr.msk.f32.mxu1 %vm1181_vm2, %v1255_v62 }
 0x4df   : > { %3239 = vmatmul.mubr.msk.f32.vlgmr.msra.gmra.mrb[10].mxu1 %vm1181_vm2, %v1257_v63 }
 0x4e1   : > { %3717 = vrot.lane.b32.xlu0 %v4565_v58, %s4111_s27 }
 0x4e5   : > { %3722 = vrot.lane.b32.xlu0 %v4565_v58, %s4113_s21 }
 0x4e9   : > { %3727 = vrot.lane.b32.xlu0 %v4565_v58, %s4112_s24  ;;  %v1210_v58 = vsub.f32 %v4580_v13, %v1196_v39 }
 0x4eb   : > { %v1222_v8 = vmul.f32 1.442695, %v1210_v58 }
 0x4ed   : > { %760 = vrot.lane.b32.xlu0 %v657_v26, %s4111_s27  ;;  %3802 = vpow2.f32 %v1222_v8 }
 0x4f1   : > { %762 = vrot.lane.b32.xlu0 %v4625_v2, %s4111_s27 }
 0x4f4   : > { %1246 = vadd.xlane.f32.xlu1 %v1245_v4 }
 0x4f7   : > { %v4635_v28 = vpop.eup %3802 }
 0x4f8   : > { %v1242_v5 = vsel %vm1181_vm2, %v4635_v28, 0.0 }
 0x505   : > { %768 = vrot.lane.b32.xlu1 %v657_v26, %s4113_s21 }
 0x510   : > { %1243 = vadd.xlane.f32.xlu0 %v1242_v5 }
 0x526   : > { %770 = vrot.lane.b32.xlu0 %v4625_v2, %s4113_s21 }
 0x52a   : > { %776 = vrot.lane.b32.xlu0 %v657_v26, %s4112_s24 }
 0x52e   : > { %778 = vrot.lane.b32.xlu0 %v4625_v2, %s4112_s24 }
 0x548   : > { %v1238_v53 = vpop.xlane.xlu1 %1237 }
 0x549   : > { %3804 = vrcp.f32 %v1238_v53 }
 0x54c   : > { %v1241_v9 = vpop.xlane.xlu0 %1240  ;;  %v1250_v10 = vpop.xlane.xlu1 %1249 }
 0x54d   : > { %3806 = vrcp.f32 %v1241_v9 }
 0x54e   : > { %3808 = vrcp.f32 %v1250_v10 }
 0x550   : > { %v1253_v12 = vpop.xlane.xlu0 %1252  ;;  %v3703_v13 = vpop.permute.xlu1 %3702 }
 0x551   : > { %3810 = vrcp.f32 %v1253_v12  ;;  %v3705_v14 = vunpack.i.h.bf16 %v3703_v13  ;;  %v3704_v15 = vunpack.i.l.bf16 %v3703_v13 }
 0x553   : > { %v3805_v16 = vpop.eup %3804  ;;  %v3448_v17 = vpack.c.bf16 %v3705_v14, %v3704_v15 }
 0x554   : > { %v3708_v18 = vpop.permute.xlu0 %3707  ;;  %v1259_v19 = vmul.f32 %v3805_v16, %v4589_v46 }
 0x555   : > { %v3710_v20 = vunpack.i.h.bf16 %v3708_v18  ;;  %v3709_v21 = vunpack.i.l.bf16 %v3708_v18  ;;  %3449 = vmatprep.subr.bf16.mxu1 %v3448_v17 }
 0x556   : > { %3451 = vmatpush3.bf16.msra.mxu1 %v3448_v17  ;;  %3245 = vmatprep.mubr.msk.f32.mxu1 %vm1181_vm2, %v1259_v19 }
 0x557   : > { %v3807_v23 = vpop.eup %3806  ;;  %v3456_v24 = vpack.c.bf16 %v3710_v20, %v3709_v21 }
 0x558   : > { %v3809_v25 = vpop.eup %3808  ;;  %v1261_v27 = vmul.f32 %v3807_v23, %v4595_v49  ;;  %v3713_v29 = vpop.permute.xlu0 %3712 }
 0x559   : > { %v3715_v30 = vunpack.i.h.bf16 %v3713_v29  ;;  %v3714_v31 = vunpack.i.l.bf16 %v3713_v29  ;;  %3457 = vmatprep.subr.bf16.mxu1 %v3456_v24  ;;  %v1267_v32 = vmul.f32 %v3809_v25, %v4593_v48 }
 0x55a   : > { %3246 = vmatmul.mubr.msk.f32.vlgmr.msra.gmra.mrb[12].mxu1 %vm1181_vm2, %v1261_v27 }
 0x55b   : > { %v3811_v34 = vpop.eup %3810  ;;  %v3452_v35 = vpack.c.bf16 %v3715_v30, %v3714_v31  ;;  %3459 = vmatpush3.bf16.msra.mxu1 %v3456_v24  ;;  %3259 = vmatprep.mubr.msk.f32.mxu1 %vm1181_vm2, %v1267_v32 }
 0x55c   : > { %v1269_v36 = vmul.f32 %v3811_v34, %v4601_v52  ;;  %3462 = vmatprep.subr.msk.bf16.mxu1 %vm4519_vm1, %v4567_v59  ;;  %v3718_v40 = vpop.permute.xlu0 %3717 }
 0x55d   : > { %3453 = vmatprep.subr.bf16.mxu0 %v3452_v35  ;;  %v3720_v41 = vunpack.i.h.bf16 %v3718_v40  ;;  %v3719_v42 = vunpack.i.l.bf16 %v3718_v40 }
 0x55e   : > { %3455 = vmatpush3.bf16.msra.mxu0 %v3452_v35  ;;  %3260 = vmatmul.mubr.msk.f32.vlgmr.msra.gmra.mrb[14].mxu1 %vm1181_vm2, %v1269_v36 }
 0x55f   : > { %3266 = vmatprep.mubr.msk.f32.mxu1 %vm848_vm0, %v657_v26  ;;  %v3466_v46 = vpack.c.bf16 %v3720_v41, %v3719_v42 }
 0x560   : > { %v3723_v6 = vpop.permute.xlu0 %3722 }
 0x561   : > { %v3725_v44 = vunpack.i.h.bf16 %v3723_v6  ;;  %v3724_v45 = vunpack.i.l.bf16 %v3723_v6 }
 0x563   : > { %v3472_v47 = vpack.c.bf16 %v3725_v44, %v3724_v45 }
 0x564   : > { %3465 = vmatpush3.bf16.xpose.msk.msra.mxu1 %vm4519_vm1, %v4567_v59  ;;  %v3728_v48 = vpop.permute.xlu0 %3727 }
 0x565   : > { %3468 = vmatprep.subr.msk.bf16.mxu1 %vm4519_vm1, %v3466_v46  ;;  %3474 = vmatprep.subr.msk.bf16.mxu0 %vm4519_vm1, %v3472_v47  ;;  %v3730_v49 = vunpack.i.h.bf16 %v3728_v48  ;;  %v3729_v50 = vunpack.i.l.bf16 %v3728_v48 }
 0x567   : > { %v3478_v51 = vpack.c.bf16 %v3730_v49, %v3729_v50 }
 0x568   : > { %v761_v52 = vpop.permute.xlu0 %760 }
 0x56b   : > { %3267 = vmatmul.mubr.msk.f32.vlgmr.msra.gmra.mrb[16].mxu1 %vm848_vm0, %v4625_v2 }
 0x56c   : > { %3471 = vmatpush3.bf16.xpose.msk.msra.mxu1 %vm4519_vm1, %v3466_v46  ;;  %3273 = vmatprep.mubr.msk.f32.mxu1 %vm848_vm0, %v761_v52  ;;  %v763_v59 = vpop.permute.xlu0 %762 }
 0x56d   : > { %3480 = vmatprep.subr.msk.bf16.mxu1 %vm4519_vm1, %v3478_v51 }
 0x573   : > { %3274 = vmatmul.mubr.msk.f32.vlgmr.msra.gmra.mrb[18].mxu1 %vm848_vm0, %v763_v59 }
 0x574   : > { %3483 = vmatpush3.bf16.xpose.msk.msra.mxu1 %vm4519_vm1, %v3478_v51 }
 0x581   : > { %v1247_v54 = vpop.xlane.xlu1 %1246 }
 0x582   : > { %3812 = vrcp.f32 %v1247_v54 }
 0x585   : > { %v769_v0 = vpop.permute.xlu1 %768 }
 0x58c   : > { %v3813_v57 = vpop.eup %3812 }
 0x58d   : > { %v1265_v63 = vmul.f32 %v3813_v57, %v4627_v3 }
 0x59d   : > { %v1244_v55 = vpop.xlane.xlu0 %1243 }
 0x59e   : > { %3814 = vrcp.f32 %v1244_v55 }
 0x5a1   : > { %v771_v39 = vpop.permute.xlu0 %770 }
 0x5a5   : > { %v777_v56 = vpop.permute.xlu0 %776 }
 0x5a6   : > { %3287 = vmatprep.mubr.msk.f32.mxu1 %vm848_vm0, %v777_v56 }
 0x5a8   : > { %v3815_v33 = vpop.eup %3814 }
 0x5a9   : > { %v779_v37 = vpop.permute.xlu0 %778  ;;  %v1263_v62 = vmul.f32 %v3815_v33, %v4635_v28 }
 0x5aa   : > { %3288 = vmatmul.mubr.msk.f32.vlgmr.msra.gmra.mrb[20].mxu1 %vm848_vm0, %v779_v37 }
 0x5ab   : > { %3252 = vmatprep.mubr.msk.f32.mxu0 %vm1181_vm2, %v1263_v62 }
 0x5ac   : > { %3253 = vmatmul.mubr.msk.f32.vlgmr.msra.gmra.mrb[10].mxu0 %vm1181_vm2, %v1265_v63 }
 0x5ad   : > { %3477 = vmatpush3.bf16.xpose.msk.msra.mxu0 %vm4519_vm1, %v3472_v47  ;;  %3280 = vmatprep.mubr.msk.f32.mxu0 %vm848_vm0, %v769_v0 }
 0x5ae   : > { %3485 = vmatprep.subr.bf16.mxu0 %v4569_v60 }
 0x5b2   : > { %v4683_v1 = vpop.f32.mrb[10].mxu1 }
 0x5b3   : > { %v4685_v26 = vpop.f32.mrb[11].mxu1 }
 0x5b4   : > { %3281 = vmatmul.mubr.msk.f32.vlgmr.msra.gmra.mrb[12].mxu0 %vm848_vm0, %v771_v39 }
 0x5b5   : > { %3487 = vmatpush3.bf16.msra.mxu0 %v4569_v60 }
 0x62d   : > { %v4689_v2 = vpop.f32.mrb[12].mxu1 }
 0x62e   : > { %v4691_v3 = vpop.f32.mrb[13].mxu1 }
 0x62f   : > { %v3746_v22 = vpack.i.bf16 %v4689_v2, %v4691_v3 }
 0x631   : > { %v4695_v4 = vpop.f32.mrb[14].mxu1 }
 0x632   : > { %v4697_v58 = vpop.f32.mrb[15].mxu1 }
 0x633   : > { %v3756_v8 = vpack.i.bf16 %v4695_v4, %v4697_v58 }
 0x63e   : > { %v3268_v28 = vpop.f32.mrb[16].mxu1 }
 0x63f   : > { %v1668_v5 = vpop.f32.mrb[17].mxu1  ;;  %v1929_v53 = vsel %vm1181_vm2, %v3268_v28, -inf }
 0x640   : > { %1930 = vmax.xlane.f32.xlu1 %v1929_v53  ;;  %v1926_v21 = vsel %vm1181_vm2, %v1668_v5, -inf }
 0x646   : > { %v3275_v60 = vpop.f32.mrb[18].mxu1 }
 0x647   : > { %v1751_v9 = vpop.f32.mrb[19].mxu1  ;;  %v1935_v23 = vsel %vm1181_vm2, %v3275_v60, -inf }
 0x648   : > { %v1932_v24 = vsel %vm1181_vm2, %v1751_v9, -inf }
 0x67d   : > { %v3289_v10 = vpop.f32.mrb[20].mxu1 }
 0x67e   : > { %v1917_v12 = vpop.f32.mrb[21].mxu1  ;;  %v1947_v20 = vsel %vm1181_vm2, %v3289_v10, -inf }
 0x67f   : > { %v4702_v13 = vpop.f32.mrb[10].mxu0  ;;  %v1944_v25 = vsel %vm1181_vm2, %v1917_v12, -inf }
 0x680   : > { %v4704_v14 = vpop.f32.mrb[11].mxu0 }
 0x681   : > { %v3751_v15 = vpack.i.bf16 %v4702_v13, %v4704_v14 }
 0x687   : > { %v3282_v16 = vpop.f32.mrb[12].mxu0 }
 0x688   : > { %v1834_v17 = vpop.f32.mrb[13].mxu0  ;;  %v1941_v18 = vsel %vm1181_vm2, %v3282_v16, -inf }
 0x689   : > { %1942 = vmax.xlane.f32.xlu1 %v1941_v18  ;;  %v1938_v19 = vsel %vm1181_vm2, %v1834_v17, -inf }
 0x68a   : > { %1939 = vmax.xlane.f32.xlu0 %v1938_v19 }
 0x68d   : > { %1948 = vmax.xlane.f32.xlu1 %v1947_v20  ;;  %v425_v20 = vld [vmem:[%s4410_s16] sm:$0xff] }
 0x68e   : > { %1927 = vmax.xlane.f32.xlu0 %v1926_v21  ;;  %v428_v21 = vld [vmem:[%s4410_s16 + $0x18] sm:$0xff] }
 0x692   : > { %1936 = vmax.xlane.f32.xlu0 %v1935_v23 }
 0x696   : > { %1933 = vmax.xlane.f32.xlu0 %v1932_v24 }
 0x69a   : > { %1945 = vmax.xlane.f32.xlu0 %v1944_v25 }
 0x6cd   : > { %v1931_v27 = vpop.xlane.xlu1 %1930 }
 0x6ce   : > { %v1951_v29 = vsub.f32 %v3268_v28, %v1931_v27 }
 0x6d0   : > { %v1960_v35 = vmul.f32 1.442695, %v1951_v29 }
 0x716   : > { %v1943_v30 = vpop.xlane.xlu1 %1942 }
 0x717   : > { %v1955_v31 = vsub.f32 %v3282_v16, %v1943_v30  ;;  %v1940_v32 = vpop.xlane.xlu0 %1939  ;;  %v3500_v30 = vpack.c.bf16 %v428_v21, %v425_v20 }
 0x718   : > { %v1954_v34 = vsub.f32 %v1834_v17, %v1940_v32 }
 0x719   : > { %v1968_v36 = vmul.f32 1.442695, %v1955_v31 }
 0x71a   : > { %v1966_v40 = vmul.f32 1.442695, %v1954_v34  ;;  %v1949_v41 = vpop.xlane.xlu1 %1948 }
 0x71b   : > { %3816 = vpow2.f32 %v1968_v36  ;;  %v1928_v42 = vpop.xlane.xlu0 %1927  ;;  %v1957_v44 = vsub.f32 %v3289_v10, %v1949_v41  ;;  %v434_v36 = vld [vmem:[%s4410_s16 + $0x48] sm:$0xff] }
 0x71c   : > { %3818 = vpow2.f32 %v1966_v40  ;;  %v1950_v6 = vsub.f32 %v1668_v5, %v1928_v42 }
 0x71d   : > { %3820 = vpow2.f32 %v1960_v35  ;;  %v1972_v48 = vmul.f32 1.442695, %v1957_v44  ;;  %v431_v35 = vld [vmem:[%s4410_s16 + $0x30] sm:$0xff] }
 0x71e   : > { %v1958_v45 = vmul.f32 1.442695, %v1950_v6 }
 0x71f   : > { %v1937_v46 = vpop.xlane.xlu0 %1936 }
 0x720   : > { %3822 = vpow2.f32 %v1958_v45  ;;  %v1953_v47 = vsub.f32 %v3275_v60, %v1937_v46 }
 0x722   : > { %v1964_v49 = vmul.f32 1.442695, %v1953_v47  ;;  %v3504_v47 = vpack.c.bf16 %v434_v36, %v431_v35 }
 0x723   : > { %v1934_v50 = vpop.xlane.xlu0 %1933 }
 0x724   : > { %3824 = vpow2.f32 %v1964_v49  ;;  %v1952_v51 = vsub.f32 %v1751_v9, %v1934_v50 }
 0x725   : > { %v4715_v52 = vpop.eup %3816  ;;  %3826 = vpow2.f32 %v1972_v48 }
 0x726   : > { %v4717_v59 = vpop.eup %3818  ;;  %v1962_v54 = vmul.f32 1.442695, %v1952_v51  ;;  %v1989_v55 = vsel %vm1181_vm2, %v4715_v52, 0.0 }
 0x727   : > { %v3821_v39 = vpop.eup %3820  ;;  %1990 = vadd.xlane.f32.xlu1 %v1989_v55  ;;  %v1946_v56 = vpop.xlane.xlu0 %1945  ;;  %v1986_v57 = vsel %vm1181_vm2, %v4717_v59, 0.0  ;;  %v440_v55 = vld [vmem:[%s4410_s16 + $0x78] sm:$0xff] }
 0x728   : > { %3828 = vpow2.f32 %v1962_v54  ;;  %v1956_v33 = vsub.f32 %v1917_v12, %v1946_v56  ;;  %1987 = vadd.xlane.f32.xlu0 %v1986_v57  ;;  %v1977_v63 = vsel %vm1181_vm2, %v3821_v39, 0.0  ;;  %v437_v54 = vld [vmem:[%s4410_s16 + $0x60] sm:$0xff] }
 0x72a   : > { %v3823_v37 = vpop.eup %3822  ;;  %v1970_v62 = vmul.f32 1.442695, %v1956_v33 }
 0x72b   : > { %1978 = vadd.xlane.f32.xlu1 %v1977_v63  ;;  %v1974_v0 = vsel %vm1181_vm2, %v3823_v37, 0.0 }
 0x72c   : > { %3830 = vpow2.f32 %v1970_v62  ;;  %1975 = vadd.xlane.f32.xlu0 %v1974_v0  ;;  %v3508_v0 = vpack.c.bf16 %v440_v55, %v437_v54  ;;  %v436_v54 = vld [vmem:[%s4410_s16 + $0x58] sm:$0xff] }
 0x72e   : > { %v4725_v28 = vpop.eup %3824 }
 0x72f   : > { %v1983_v5 = vsel %vm1181_vm2, %v4725_v28, 0.0  ;;  %v4729_v53 = vpop.eup %3826 }
 0x730   : > { %1984 = vadd.xlane.f32.xlu1 %v1983_v5  ;;  %v1995_v9 = vsel %vm1181_vm2, %v4729_v53, 0.0 }
 0x732   : > { %v4731_v60 = vpop.eup %3828 }
 0x733   : > { %v1980_v10 = vsel %vm1181_vm2, %v4731_v60, 0.0 }
 0x734   : > { %1996 = vadd.xlane.f32.xlu1 %v1995_v9  ;;  %1981 = vadd.xlane.f32.xlu0 %v1980_v10 }
 0x736   : > { %v4737_v12 = vpop.eup %3830 }
 0x737   : > { %v1992_v16 = vsel %vm1181_vm2, %v4737_v12, 0.0 }
 0x738   : > { %1993 = vadd.xlane.f32.xlu0 %v1992_v16  ;;  %v449_v16 = vld [vmem:[%s4410_s16 + $0xc0] sm:$0xff] }
 0x745   : > { %3737 = vrot.lane.b32.xlu1 %v4571_v61, %s4113_s21 }
 0x749   : > { %3742 = vrot.lane.b32.xlu1 %v4571_v61, %s4112_s24 }
 0x74d   : > { %3752 = vrot.lane.b32.xlu1 %v3751_v15, %s4113_s21 }
 0x74e   : > { %3732 = vrot.lane.b32.xlu0 %v4571_v61, %s4111_s27 }
 0x752   : > { %3747 = vrot.lane.b32.xlu0 %v3746_v22, %s4112_s24 }
 0x756   : > { %3757 = vrot.lane.b32.xlu0 %v3756_v8, %s4111_s27 }
 0x7b4   : > { %v1991_v17 = vpop.xlane.xlu1 %1990 }
 0x7b5   : > { %v1988_v18 = vpop.xlane.xlu0 %1987 }
 0x7b6   : > { %3832 = vrcp.f32 %v1988_v18 }
 0x7b8   : > { %v1979_v19 = vpop.xlane.xlu1 %1978 }
 0x7b9   : > { %3834 = vrcp.f32 %v1979_v19  ;;  %v1976_v13 = vpop.xlane.xlu0 %1975  ;;  %v458_v19 = vld [vmem:[%s4410_s16 + $0x108] sm:$0xff] }
 0x7ba   : > { %3836 = vrcp.f32 %v1976_v13 }
 0x7bb   : > { %3838 = vrcp.f32 %v1991_v17  ;;  %v452_v17 = vld [vmem:[%s4410_s16 + $0xd8] sm:$0xff] }
 0x7bc   : > { %v3516_v18 = vpack.c.bf16 %v452_v17, %v449_v16 }
 0x7bd   : > { %v1985_v61 = vpop.xlane.xlu1 %1984 }
 0x7be   : > { %3840 = vrcp.f32 %v1985_v61  ;;  %v461_v61 = vld [vmem:[%s4410_s16 + $0x120] sm:$0xff] }
 0x7c0   : > { %v3833_v2 = vpop.eup %3832 }
 0x7c1   : > { %v1997_v14 = vpop.xlane.xlu1 %1996  ;;  %v1982_v15 = vpop.xlane.xlu0 %1981  ;;  %v2007_v27 = vmul.f32 %v3833_v2, %v4717_v59  ;;  %v467_v2 = vld [vmem:[%s4410_s16 + $0x150] sm:$0xff] }
 0x7c2   : > { %3842 = vrcp.f32 %v1982_v15 }
 0x7c3   : > { %v3835_v3 = vpop.eup %3834 }
 0x7c4   : > { %v3837_v22 = vpop.eup %3836  ;;  %v2001_v23 = vmul.f32 %v3835_v3, %v3821_v39  ;;  %v470_v3 = vld [vmem:[%s4410_s16 + $0x168] sm:$0xff] }
 0x7c5   : > { %v3738_v4 = vpop.permute.xlu1 %3737  ;;  %v1994_v58 = vpop.xlane.xlu0 %1993  ;;  %v1999_v8 = vmul.f32 %v3837_v22, %v3823_v37  ;;  %v3528_v22 = vpack.c.bf16 %v470_v3, %v467_v2 }
 0x7c6   : > { %v3740_v24 = vunpack.i.h.bf16 %v3738_v4  ;;  %v3739_v25 = vunpack.i.l.bf16 %v3738_v4  ;;  %3844 = vrcp.f32 %v1994_v58  ;;  %v3839_v31 = vpop.eup %3838 }
 0x7c7   : > { %3846 = vrcp.f32 %v1997_v14  ;;  %3294 = vmatprep.mubr.msk.f32.mxu0 %vm1181_vm2, %v1999_v8  ;;  %v2009_v45 = vmul.f32 %v3839_v31, %v4715_v52  ;;  %v464_v14 = vld [vmem:[%s4410_s16 + $0x138] sm:$0xff] }
 0x7c8   : > { %v3492_v29 = vpack.c.bf16 %v3740_v24, %v3739_v25  ;;  %3295 = vmatmul.mubr.msk.f32.vlgmr.msra.gmra.mrb[14].mxu0 %vm1181_vm2, %v2001_v23  ;;  %v3841_v44 = vpop.eup %3840  ;;  %v3524_v15 = vpack.c.bf16 %v464_v14, %v461_v61 }
 0x7c9   : > { %v3743_v32 = vpop.permute.xlu1 %3742  ;;  %3308 = vmatprep.mubr.msk.f32.mxu0 %vm1181_vm2, %v2007_v27  ;;  %v3733_v34 = vpop.permute.xlu0 %3732  ;;  %v2005_v57 = vmul.f32 %v3841_v44, %v4725_v28  ;;  %v443_v28 = vld [vmem:[%s4410_s16 + $0x90] sm:$0xff]  ;;  %v3872_v44 = vld [vmem:[#allocation11] sm:$0xff] }
 0x7ca   : > { %v3745_v40 = vunpack.i.h.bf16 %v3743_v32  ;;  %v3744_v41 = vunpack.i.l.bf16 %v3743_v32  ;;  %v3735_v42 = vunpack.i.h.bf16 %v3733_v34  ;;  %v3734_v6 = vunpack.i.l.bf16 %v3733_v34  ;;  %3493 = vmatprep.subr.bf16.mxu0 %v3492_v29 }
 0x7cb   : > { %3495 = vmatpush3.bf16.msra.mxu0 %v3492_v29 }
 0x7cc   : > { %v3488_v46 = vpack.c.bf16 %v3735_v42, %v3734_v6  ;;  %3501 = vmatprep.subr.bf16.mxu0 %v3500_v30  ;;  %v3843_v48 = vpop.eup %3842  ;;  %v3496_v51 = vpack.c.bf16 %v3745_v40, %v3744_v41  ;;  %v4811_v40 = vrot.slane %v4503_v7, %v4487_v43  ;;  %v427_v7 = vld [vmem:[%s4410_s16 + $0x10] sm:$0xff] }
 0x7cd   : > { %v4768_v49 = vpop.permute.xlu1 %3752  ;;  %v4770_v50 = vpop.permute.xlu0 %3747  ;;  %v2003_v52 = vmul.f32 %v3843_v48, %v4731_v60  ;;  %v446_v60 = vld [vmem:[%s4410_s16 + $0xa8] sm:$0xff] }
 0x7ce   : > { %v3749_v59 = vunpack.i.l.bf16 %v4770_v50  ;;  %3489 = vmatprep.subr.bf16.mxu1 %v3488_v46  ;;  %3309 = vmatmul.mubr.msk.f32.vlgmr.msra.gmra.mrb[16].mxu0 %vm1181_vm2, %v2009_v45  ;;  %v3754_v39 = vunpack.i.l.bf16 %v4768_v49  ;;  %v3750_v4 = vunpack.i.h.bf16 %v4770_v50  ;;  %v3755_v58 = vunpack.i.h.bf16 %v4768_v49  ;;  %v430_v48 = vld [vmem:[%s4410_s16 + $0x28] sm:$0xff] }
 0x7cf   : > { %3491 = vmatpush3.bf16.msra.mxu1 %v3488_v46  ;;  %3503 = vmatpush3.bf16.msra.mxu0 %v3500_v30  ;;  %v426_v49 = vld [vmem:[%s4410_s16 + $0x8] sm:$0xff]  ;;  %v3532_v50 = vpack.c.bf16 %v430_v48, %v427_v7  ;;  %v465_v7 = vld [vmem:[%s4410_s16 + $0x140] sm:$0xff] }
 0x7d0   : > { %v3845_v56 = vpop.eup %3844  ;;  %3497 = vmatprep.subr.bf16.mxu1 %v3496_v51  ;;  %3505 = vmatprep.subr.bf16.mxu0 %v3504_v47  ;;  %v2386_v33 = vsel %vm848_vm0, %v4685_v26, %v3749_v59  ;;  %v2387_v8 = vsel %vm848_vm0, %v4683_v1, %v3750_v4  ;;  %v433_v59 = vld [vmem:[%s4410_s16 + $0x40] sm:$0xff] }
 0x7d1   : > { %v3847_v37 = vpop.eup %3846  ;;  %3301 = vmatprep.mubr.msk.f32.mxu1 %vm1181_vm2, %v2003_v52  ;;  %v3758_v62 = vpop.permute.xlu0 %3757  ;;  %v2011_v63 = vmul.f32 %v3845_v56, %v4737_v12  ;;  %v2391_v26 = vsel %vm2390_vm3, %v2386_v33, %v3754_v39  ;;  %v3512_v12 = vpack.c.bf16 %v446_v60, %v443_v28  ;;  %v2392_v21 = vsel %vm2390_vm3, %v2387_v8, %v3755_v58  ;;  %v432_v52 = vld [vmem:[%s4410_s16 + $0x38] sm:$0xff]  ;;  %v435_v56 = vld [vmem:[%s4410_s16 + $0x50] sm:$0xff]  ;;  %v442_v33 = vld [vmem:[%s4410_s16 + $0x88] sm:$0xff] }
 0x7d2   : > { %v3759_v5 = vunpack.i.l.bf16 %v3758_v62  ;;  %3302 = vmatmul.mubr.msk.f32.vlgmr.msra.gmra.mrb[22].mxu1 %vm1181_vm2, %v2005_v57  ;;  %v2013_v9 = vmul.f32 %v3847_v37, %v4729_v53  ;;  %v455_v53 = vld [vmem:[%s4410_s16 + $0xf0] sm:$0xff]  ;;  %v3760_v20 = vunpack.i.h.bf16 %v3758_v62  ;;  %v3536_v39 = vpack.c.bf16 %v436_v54, %v433_v59  ;;  %v445_v58 = vld [vmem:[%s4410_s16 + $0xa0] sm:$0xff]  ;;  %v448_v8 = vld [vmem:[%s4410_s16 + $0xb8] sm:$0xff] }
 0x7d3   : > { %3499 = vmatpush3.bf16.msra.mxu1 %v3496_v51  ;;  %3315 = vmatprep.mubr.msk.f32.mxu1 %vm1181_vm2, %v2011_v63  ;;  %v3520_v13 = vpack.c.bf16 %v458_v19, %v455_v53  ;;  %v429_v51 = vld [vmem:[%s4410_s16 + $0x20] sm:$0xff]  ;;  %v439_v57 = vld [vmem:[%s4410_s16 + $0x70] sm:$0xff]  ;;  %v3538_v37 = vpack.c.bf16 %v435_v56, %v432_v52  ;;  %v438_v63 = vld [vmem:[%s4410_s16 + $0x68] sm:$0xff] }
 0x7d4   : > { %3507 = vmatpush3.bf16.msra.mxu0 %v3504_v47  ;;  %v2396_v10 = vsel %vm2395_vm4, %v2391_v26, %v3759_v5  ;;  %v2397_v23 = vsel %vm2395_vm4, %v2392_v21, %v3760_v20  ;;  %v3873_v47 = vld [vmem:[#allocation11 + $0x8] sm:$0xff]  ;;  %v3534_v55 = vpack.c.bf16 %v429_v51, %v426_v49  ;;  %3533 = vmatprep.subr.bf16.mxu1 %v3532_v50  ;;  %v444_v21 = vld [vmem:[%s4410_s16 + $0x98] sm:$0xff]  ;;  %v469_v49 = vld [vmem:[%s4410_s16 + $0x160] sm:$0xff] }
 0x7d5   : > { %3350 = vmatprep.mubr.f32.mxu0 %v2396_v10  ;;  %3509 = vmatprep.subr.bf16.mxu0 %v3508_v0  ;;  %v3540_v62 = vpack.c.bf16 %v442_v33, %v439_v57  ;;  %v3544_v20 = vpack.c.bf16 %v448_v8, %v445_v58  ;;  %v472_v50 = vld [vmem:[%s4410_s16 + $0x178] sm:$0xff]  ;;  %v471_v54 = vld [vmem:[%s4410_s16 + $0x170] sm:$0xff]  ;;  %v4861_v33 = vsub.s32 1, %v4484_v38 }
 0x7d6   : > { %3316 = vmatmul.mubr.msk.f32.vlgmr.msra.gmra.mrb[24].mxu1 %vm1181_vm2, %v2013_v9  ;;  %v3560_v51 = vpack.c.bf16 %v472_v50, %v469_v49  ;;  %v468_v59 = vld [vmem:[%s4410_s16 + $0x158] sm:$0xff]  ;;  %v491_v58 = vld [vmem:[%s4416_s26 + $0x90] sm:$0xff] }
 0x7d7   : > { %2625 = vmatprep.mubr.f32.mxu1 %v4110_v11  ;;  %3535 = vmatpush1.bf16.msra.mxu1 %v3534_v55  ;;  %v3562_v55 = vpack.c.bf16 %v471_v54, %v468_v59  ;;  %v492_v8 = vld [vmem:[%s4416_s26 + $0x98] sm:$0xff]  ;;  %v499_v49 = vld [vmem:[%s4416_s26 + $0xd0] sm:$0xff] }
 0x7d8   : > { %3511 = vmatpush3.bf16.msra.mxu0 %v3508_v0  ;;  %3537 = vmatprep.subr.bf16.mxu1 %v3536_v39  ;;  %v441_v0 = vld [vmem:[%s4410_s16 + $0x80] sm:$0xff]  ;;  %v500_v50 = vld [vmem:[%s4416_s26 + $0xd8] sm:$0xff]  ;;  %v483_v59 = vld [vmem:[%s4416_s26 + $0x50] sm:$0xff] }
 0x7d9   : > { %3513 = vmatprep.subr.bf16.mxu0 %v3512_v12  ;;  %v3542_v5 = vpack.c.bf16 %v441_v0, %v438_v63  ;;  %v484_v54 = vld [vmem:[%s4416_s26 + $0x58] sm:$0xff] }
 0x7db   : > { %3539 = vmatpush1.bf16.msra.mxu1 %v3538_v37 }
 0x7dc   : > { %3515 = vmatpush3.bf16.msra.mxu0 %v3512_v12  ;;  %3541 = vmatprep.subr.bf16.mxu1 %v3540_v62  ;;  %v4864_v62 = vld [vmem:[%s4402_s18] sm:$0xff] }
 0x7dd   : > { %3517 = vmatprep.subr.bf16.mxu0 %v3516_v18  ;;  %v4868_v63 = vrot.slane %v4864_v62, %v4861_v33 }
 0x7df   : > { %3543 = vmatpush1.bf16.msra.mxu1 %v3542_v5 }
 0x7e0   : > { %3519 = vmatpush3.bf16.msra.mxu0 %v3516_v18  ;;  %3545 = vmatprep.subr.bf16.mxu1 %v3544_v20  ;;  %v3568_v20 = vpack.c.bf16 %v492_v8, %v491_v58 }
 0x7e1   : > { %3521 = vmatprep.subr.bf16.mxu0 %v3520_v13 }
 0x7e4   : > { %3523 = vmatpush3.bf16.msra.mxu0 %v3520_v13 }
 0x7e5   : > { %3525 = vmatprep.subr.bf16.mxu0 %v3524_v15 }
 0x7e8   : > { %3527 = vmatpush3.bf16.msra.mxu0 %v3524_v15 }
 0x7e9   : > { %3529 = vmatprep.subr.bf16.mxu0 %v3528_v22 }
 0x7ec   : > { %3531 = vmatpush3.bf16.msra.mxu0 %v3528_v22 }
 0x7ef   : > { %3351 = vmatmul.mubr.f32.vlgmr.msra.gmra.mrb[18].mxu0 %v2397_v23  ;;  %v447_v23 = vld [vmem:[%s4410_s16 + $0xb0] sm:$0xff] }
 0x89b   : > { %v3296_v24 = vpop.f32.mrb[14].mxu0 }
 0x89c   : > { %v2086_v25 = vpop.f32.mrb[15].mxu0 }
 0x8a1   : > { %v3310_v27 = vpop.f32.mrb[16].mxu0 }
 0x8a2   : > { %v2248_v29 = vpop.f32.mrb[17].mxu0 }
 0x8a3   : > { %v3761_v30 = vpack.i.bf16 %v3310_v27, %v2248_v29  ;;  %v454_v27 = vld [vmem:[%s4410_s16 + $0xe8] sm:$0xff] }
 0x8a5   : > { %3762 = vrot.lane.b32.xlu0 %v3761_v30, %s4113_s21  ;;  %v3303_v31 = vpop.f32.mrb[22].mxu1  ;;  %v450_v30 = vld [vmem:[%s4410_s16 + $0xc8] sm:$0xff] }
 0x8a6   : > { %v2167_v32 = vpop.f32.mrb[23].mxu1 }
 0x8a7   : > { %v3766_v34 = vpack.i.bf16 %v3303_v31, %v2167_v32  ;;  %v453_v31 = vld [vmem:[%s4410_s16 + $0xe0] sm:$0xff] }
 0x8a8   : > { %v457_v32 = vld [vmem:[%s4410_s16 + $0x100] sm:$0xff] }
 0x8a9   : > { %3767 = vrot.lane.b32.xlu1 %v3766_v34, %s4112_s24  ;;  %v3317_v1 = vpop.f32.mrb[24].mxu1  ;;  %v3550_v34 = vpack.c.bf16 %v453_v31, %v450_v30  ;;  %v477_v30 = vld [vmem:[%s4416_s26 + $0x20] sm:$0xff]  ;;  %v478_v31 = vld [vmem:[%s4416_s26 + $0x28] sm:$0xff] }
 0x8aa   : > { %v2329_v35 = vpop.f32.mrb[25].mxu1 }
 0x8ab   : > { %v3771_v36 = vpack.i.bf16 %v3317_v1, %v2329_v35  ;;  %v460_v1 = vld [vmem:[%s4410_s16 + $0x118] sm:$0xff] }
 0x8ac   : > { %v456_v35 = vld [vmem:[%s4410_s16 + $0xf8] sm:$0xff] }
 0x8ad   : > { %3772 = vrot.lane.b32.xlu1 %v3771_v36, %s4111_s27  ;;  %v459_v36 = vld [vmem:[%s4410_s16 + $0x110] sm:$0xff] }
 0x8c2   : > { %v3352_v41 = vpop.f32.mrb[18].mxu0 }
 0x8c3   : > { %v2470_v42 = vpop.f32.mrb[19].mxu0  ;;  %v2476_v46 = vadd.f32 %v3352_v41, %v4811_v40  ;;  %v3552_v41 = vpack.c.bf16 %v460_v1, %v457_v32  ;;  %v3574_v32 = vpack.c.bf16 %v478_v31, %v477_v30  ;;  %v496_v1 = vld [vmem:[%s4416_s26 + $0xb8] sm:$0xff] }
 0x8c4   : > { %v2471_v6 = vadd.f32 %v2470_v42, %v4811_v40  ;;  %v463_v42 = vld [vmem:[%s4410_s16 + $0x130] sm:$0xff] }
 0x8c5   : > { %v4818_v43 = vadd.f32 %v3873_v47, %v2476_v46  ;;  %v462_v47 = vld [vmem:[%s4410_s16 + $0x128] sm:$0xff] }
 0x8c6   : > { %v4814_v45 = vadd.f32 %v3872_v44, %v2471_v6  ;;  %v466_v6 = vld [vmem:[%s4410_s16 + $0x148] sm:$0xff]  ;;  %v3554_v44 = vpack.c.bf16 %v459_v36, %v456_v35  ;;  %v3558_v48 = vpack.c.bf16 %v465_v7, %v462_v47  ;;  %v479_v36 = vld [vmem:[%s4416_s26 + $0x30] sm:$0xff]  ;;  %v481_v47 = vld [vmem:[%s4416_s26 + $0x40] sm:$0xff] }
 0x8c7   : > { %v3556_v46 = vpack.c.bf16 %v466_v6, %v463_v42  ;;  %v497_v6 = vld [vmem:[%s4416_s26 + $0xc0] sm:$0xff]  ;;  %v482_v7 = vld [vmem:[%s4416_s26 + $0x48] sm:$0xff] }
 0x8c8   : > { %2493 = vadd.xlane.f32.xlu0 %v4814_v45 }
 0x8d1   : > { %2495 = vadd.xlane.f32.xlu1 %v4818_v43 }
 0x917   : > { %v3763_v60 = vpop.permute.xlu0 %3762 }
 0x918   : > { %v3765_v16 = vunpack.i.h.bf16 %v3763_v60  ;;  %v3764_v17 = vunpack.i.l.bf16 %v3763_v60 }
 0x91b   : > { %v3768_v28 = vpop.permute.xlu1 %3767 }
 0x91c   : > { %v3770_v26 = vunpack.i.h.bf16 %v3768_v28  ;;  %v3769_v9 = vunpack.i.l.bf16 %v3768_v28 }
 0x91e   : > { %v2388_v10 = vsel %vm848_vm0, %v2086_v25, %v3769_v9  ;;  %v2389_v12 = vsel %vm848_vm0, %v3296_v24, %v3770_v26  ;;  %v3546_v24 = vpack.c.bf16 %v447_v23, %v444_v21  ;;  %v451_v25 = vld [vmem:[%s4410_s16 + $0xd0] sm:$0xff]  ;;  %v476_v23 = vld [vmem:[%s4416_s26 + $0x18] sm:$0xff] }
 0x91f   : > { %v3773_v18 = vpop.permute.xlu1 %3772  ;;  %v2393_v13 = vsel %vm2390_vm3, %v2388_v10, %v3764_v17  ;;  %v2394_v61 = vsel %vm2390_vm3, %v2389_v12, %v3765_v16  ;;  %v3548_v29 = vpack.c.bf16 %v454_v27, %v451_v25  ;;  %v4872_v26 = vld [vmem:[%s4402_s18 + $0x8] sm:$0xff]  ;;  %v493_v25 = vld [vmem:[%s4416_s26 + $0xa0] sm:$0xff]  ;;  %v494_v27 = vld [vmem:[%s4416_s26 + $0xa8] sm:$0xff] }
 0x920   : > { %v3775_v53 = vunpack.i.h.bf16 %v3773_v18  ;;  %v3774_v19 = vunpack.i.l.bf16 %v3773_v18  ;;  %3547 = vmatpush1.bf16.msra.mxu1 %v3546_v24  ;;  %v4876_v9 = vrot.slane %v4872_v26, %v4861_v33  ;;  %v3876_v16 = vld [vmem:[#allocation11 + $0x10] sm:$0xff] }
 0x921   : > { %3549 = vmatprep.subr.bf16.mxu1 %v3548_v29  ;;  %v475_v21 = vld [vmem:[%s4416_s26 + $0x10] sm:$0xff]  ;;  %v3572_v29 = vpack.c.bf16 %v494_v27, %v493_v25 }
 0x922   : > { %v2398_v14 = vsel %vm2395_vm4, %v2393_v13, %v3774_v19  ;;  %v2399_v15 = vsel %vm2395_vm4, %v2394_v61, %v3775_v53  ;;  %v3877_v13 = vld [vmem:[#allocation11 + $0x18] sm:$0xff]  ;;  %v3570_v24 = vpack.c.bf16 %v476_v23, %v475_v21 }
 0x923   : > { %3353 = vmatprep.mubr.f32.mxu0 %v2398_v14  ;;  %v489_v14 = vld [vmem:[%s4416_s26 + $0x80] sm:$0xff] }
 0x924   : > { %3354 = vmatmul.mubr.f32.gmra.mrb[20].mxu0 %v2399_v15  ;;  %3551 = vmatpush1.bf16.msra.mxu1 %v3550_v34  ;;  %v490_v15 = vld [vmem:[%s4416_s26 + $0x88] sm:$0xff]  ;;  %v495_v34 = vld [vmem:[%s4416_s26 + $0xb0] sm:$0xff] }
 0x925   : > { %3553 = vmatprep.subr.bf16.mxu1 %v3552_v41  ;;  %v3576_v35 = vpack.c.bf16 %v496_v1, %v495_v34  ;;  %v480_v41 = vld [vmem:[%s4416_s26 + $0x38] sm:$0xff] }
 0x926   : > { %v3578_v42 = vpack.c.bf16 %v480_v41, %v479_v36 }
 0x928   : > { %3555 = vmatpush1.bf16.msra.mxu1 %v3554_v44  ;;  %v498_v44 = vld [vmem:[%s4416_s26 + $0xc8] sm:$0xff] }
 0x929   : > { %3557 = vmatprep.subr.bf16.mxu1 %v3556_v46  ;;  %v3580_v46 = vpack.c.bf16 %v498_v44, %v497_v6 }
 0x92c   : > { %3559 = vmatpush1.bf16.msra.mxu1 %v3558_v48  ;;  %v3582_v48 = vpack.c.bf16 %v482_v7, %v481_v47 }
 0x92d   : > { %3561 = vmatprep.subr.bf16.mxu1 %v3560_v51  ;;  %v3584_v51 = vpack.c.bf16 %v500_v50, %v499_v49 }
 0x930   : > { %3563 = vmatpush1.bf16.msra.mxu1 %v3562_v55  ;;  %v3586_v55 = vpack.c.bf16 %v484_v54, %v483_v59 }
 0x955   : > { %v2494_v2 = vpop.xlane.xlu0 %2493 }
 0x956   : > { %v2501_v3 = vmul.f32 0.0078125, %v2494_v2  ;;  %v3564_v2 = vpack.c.bf16 %v490_v15, %v489_v14 }
 0x958   : > { %v2505_v22 = vsub.f32 %v4814_v45, %v2501_v3  ;;  %v473_v3 = vld [vmem:[%s4416_s26] sm:$0xff]  ;;  %3565 = vmatprep.subr.bf16.mxu0 %v3564_v2 }
 0x95a   : > { %v2509_v4 = vmul.f32 %v2505_v22, %v2505_v22 }
 0x95c   : > { %2513 = vadd.xlane.f32.xlu1 %v2509_v4 }
 0x95e   : > { %v2496_v39 = vpop.xlane.xlu1 %2495 }
 0x95f   : > { %v2502_v10 = vmul.f32 0.0078125, %v2496_v39  ;;  %v501_v39 = vld [vmem:[%s4416_s26 + $0xe0] sm:$0xff] }
 0x961   : > { %v4885_v19 = vsub.f32 %v4818_v43, %v2502_v10  ;;  %v487_v10 = vld [vmem:[%s4416_s26 + $0x70] sm:$0xff] }
 0x9e9   : > { %v2514_v52 = vpop.xlane.xlu1 %2513 }
 0x9ea   : > { %v2521_v56 = vmul.f32 0.0078125, %v2514_v52  ;;  %v502_v52 = vld [vmem:[%s4416_s26 + $0xe8] sm:$0xff] }
 0x9ec   : > { %v2525_v57 = vadd.f32 1e-06, %v2521_v56  ;;  %v3588_v56 = vpack.c.bf16 %v502_v52, %v501_v39 }
 0x9ee   : > { %3848 = vrsqrt.f32 %v2525_v57  ;;  %v485_v57 = vld [vmem:[%s4416_s26 + $0x60] sm:$0xff] }
 0x9f7   : > { %v3355_v37 = vpop.f32.mrb[20].mxu0 }
 0x9f8   : > { %v3849_v0 = vpop.eup %3848  ;;  %v2480_v5 = vpop.f32.mrb[21].mxu0  ;;  %v2486_v12 = vadd.f32 %v3355_v37, %v4811_v40  ;;  %v486_v37 = vld [vmem:[%s4416_s26 + $0x68] sm:$0xff] }
 0x9f9   : > { %v2481_v28 = vadd.f32 %v2480_v5, %v4811_v40  ;;  %v2533_v60 = vmul.f32 %v3849_v0, %v2505_v22  ;;  %v2510_v40 = vmul.f32 %v4885_v19, %v4885_v19  ;;  %v474_v22 = vld [vmem:[%s4416_s26 + $0x8] sm:$0xff]  ;;  %v3590_v0 = vpack.c.bf16 %v486_v37, %v485_v57  ;;  %v503_v5 = vld [vmem:[%s4416_s26 + $0xf0] sm:$0xff] }
 0x9fa   : > { %v4887_v61 = vadd.f32 %v3877_v13, %v2486_v12  ;;  %v3566_v4 = vpack.c.bf16 %v474_v22, %v473_v3  ;;  %v488_v12 = vld [vmem:[%s4416_s26 + $0x78] sm:$0xff] }
 0x9fb   : > { %v4879_v17 = vadd.f32 %v3876_v16, %v2481_v28  ;;  %v2541_v18 = vmul.f32 %v4868_v63, %v2533_v60  ;;  %v504_v28 = vld [vmem:[%s4416_s26 + $0xf8] sm:$0xff]  ;;  %v3594_v16 = vpack.c.bf16 %v488_v12, %v487_v10 }
 0x9fc   : > { %3567 = vmatpush3.bf16.msra.mxu0 %v3566_v4  ;;  %v3592_v60 = vpack.c.bf16 %v504_v28, %v503_v5 }
 0x9fd   : > { %2497 = vadd.xlane.f32.xlu0 %v4879_v17  ;;  %v2549_v53 = vadd.f32 %v4876_v9, %v2541_v18  ;;  %3569 = vmatprep.subr.bf16.mxu0 %v3568_v20 }
 0x9ff   : > { %2626 = vmatmul.mubr.f32.vlgmr.msra.gmra.mrb[26].mxu1 %v2549_v53 }
 0xa00   : > { %2631 = vmatprep.mubr.f32.mxu1 %v4110_v11  ;;  %3571 = vmatpush3.bf16.msra.mxu0 %v3570_v24  ;;  %v2555_v24 = vsub.s32 3, %v4484_v38 }
 0xa01   : > { %2499 = vadd.xlane.f32.xlu0 %v4887_v61  ;;  %3573 = vmatprep.subr.bf16.mxu0 %v3572_v29 }
 0xa02   : > { %v4933_v25 = vrot.slane %v4864_v62, %v2555_v24  ;;  %v4936_v27 = vrot.slane %v4872_v26, %v2555_v24 }
 0xa04   : > { %3575 = vmatpush3.bf16.msra.mxu0 %v3574_v32 }
 0xa05   : > { %2515 = vadd.xlane.f32.xlu0 %v2510_v40  ;;  %3577 = vmatprep.subr.bf16.mxu0 %v3576_v35 }
 0xa08   : > { %3579 = vmatpush3.bf16.msra.mxu0 %v3578_v42 }
 0xa09   : > { %3581 = vmatprep.subr.bf16.mxu0 %v3580_v46 }
 0xa0c   : > { %3583 = vmatpush3.bf16.msra.mxu0 %v3582_v48 }
 0xa0d   : > { %3585 = vmatprep.subr.bf16.mxu0 %v3584_v51 }
 0xa10   : > { %3587 = vmatpush3.bf16.msra.mxu0 %v3586_v55 }
 0xa11   : > { %3589 = vmatprep.subr.bf16.mxu0 %v3588_v56 }
 0xa14   : > { %3591 = vmatpush3.bf16.msra.mxu0 %v3590_v0 }
 0xa15   : > { %3593 = vmatprep.subr.bf16.mxu0 %v3592_v60 }
 0xa18   : > { %3595 = vmatpush3.bf16.msra.mxu0 %v3594_v16 }
 0xa8a   : > { %v2498_v18 = vpop.xlane.xlu0 %2497 }
 0xa8b   : > { %v2503_v53 = vmul.f32 0.0078125, %v2498_v18 }
 0xa8d   : > { %v2507_v13 = vsub.f32 %v4879_v17, %v2503_v53 }
 0xa8e   : > { %v2500_v40 = vpop.xlane.xlu0 %2499 }
 0xa8f   : > { %v2504_v14 = vmul.f32 0.0078125, %v2500_v40  ;;  %v2511_v15 = vmul.f32 %v2507_v13, %v2507_v13 }
 0xa91   : > { %v2508_v2 = vsub.f32 %v4887_v61, %v2504_v14  ;;  %2517 = vadd.xlane.f32.xlu1 %v2511_v15 }
 0xa92   : > { %v2516_v3 = vpop.xlane.xlu0 %2515 }
 0xa93   : > { %v2522_v22 = vmul.f32 0.0078125, %v2516_v3  ;;  %v2512_v4 = vmul.f32 %v2508_v2, %v2508_v2 }
 0xa95   : > { %v2526_v58 = vadd.f32 1e-06, %v2522_v22  ;;  %2519 = vadd.xlane.f32.xlu0 %v2512_v4 }
 0xa97   : > { %3850 = vrsqrt.f32 %v2526_v58 }
 0xaa1   : > { %v3851_v8 = vpop.eup %3850 }
 0xaa2   : > { %v2534_v20 = vmul.f32 %v3851_v8, %v4885_v19 }
 0xaa4   : > { %v2542_v21 = vmul.f32 %v4868_v63, %v2534_v20 }
 0xaa6   : > { %v2550_v23 = vadd.f32 %v4876_v9, %v2542_v21 }
 0xaa8   : > { %2632 = vmatmul.mubr.f32.gmra.mrb[28].mxu1 %v2550_v23 }
 0xaa9   : > { %2637 = vmatprep.mubr.f32.mxu1 %v4110_v11 }
 0xad2   : > { %v2627_v29 = vpop.f32.mrb[26].mxu1 }
 0xad3   : > { %v2628_v30 = vadd.f32 %v2627_v29, %v4933_v25  ;;  %v2629_v31 = vpop.f32.mrb[27].mxu1 }
 0xad4   : > { %v2630_v19 = vadd.f32 %v2629_v31, %v4936_v27  ;;  %v3878_v31 = vld [vmem:[%s4402_s18 + $0x10] sm:$0xff] }
 0xad5   : > { %v2650_v32 = vmul.f32 %v2628_v30, %v2628_v30 }
 0xad6   : > { %v2651_v34 = vmul.f32 %v2630_v19, %v2630_v19 }
 0xad7   : > { %v2658_v1 = vmul.f32 %v2650_v32, %v2628_v30 }
 0xad8   : > { %v2659_v35 = vmul.f32 %v2651_v34, %v2630_v19 }
 0xad9   : > { %v2666_v36 = vmul.f32 0.044715, %v2658_v1 }
 0xada   : > { %v2667_v41 = vmul.f32 0.044715, %v2659_v35 }
 0xadb   : > { %v2674_v42 = vadd.f32 %v2666_v36, %v2628_v30 }
 0xadc   : > { %v2675_v38 = vadd.f32 %v2667_v41, %v2630_v19 }
 0xadd   : > { %v2682_v6 = vmul.f32 0.7978846, %v2674_v42 }
 0xade   : > { %v2683_v62 = vmul.f32 0.7978846, %v2675_v38 }
 0xadf   : > { %3852 = vtanh.f32 %v2682_v6 }
 0xae0   : > { %3854 = vtanh.f32 %v2683_v62 }
 0xae9   : > { %v3853_v26 = vpop.eup %3852 }
 0xaea   : > { %v3855_v44 = vpop.eup %3854  ;;  %v2698_v46 = vadd.f32 1.0, %v3853_v26 }
 0xaeb   : > { %v2699_v47 = vadd.f32 1.0, %v3855_v44 }
 0xaec   : > { %v2706_v7 = vmul.f32 0.5, %v2698_v46 }
 0xaed   : > { %v2707_v48 = vmul.f32 0.5, %v2699_v47 }
 0xaee   : > { %v2714_v50 = vmul.f32 %v2706_v7, %v2628_v30 }
 0xaef   : > { %v2715_v49 = vmul.f32 %v2707_v48, %v2630_v19  ;;  %v4949_v19 = vrot.slane %v3878_v31, %v4861_v33 }
 0xaf1   : > { %2790 = vmatprep.mubr.f32.mxu0 %v2715_v49 }
 0xaf2   : > { %2791 = vmatmul.mubr.f32.vlgmr.msra.gmra.mrb[22].mxu0 %v2714_v50 }
 0xb1e   : > { %v2518_v51 = vpop.xlane.xlu1 %2517 }
 0xb1f   : > { %v2523_v59 = vmul.f32 0.0078125, %v2518_v51 }
 0xb21   : > { %v2527_v54 = vadd.f32 1e-06, %v2523_v59 }
 0xb22   : > { %v2520_v55 = vpop.xlane.xlu0 %2519 }
 0xb23   : > { %3856 = vrsqrt.f32 %v2527_v54  ;;  %v2524_v39 = vmul.f32 0.0078125, %v2520_v55 }
 0xb25   : > { %v2528_v52 = vadd.f32 1e-06, %v2524_v39 }
 0xb27   : > { %3858 = vrsqrt.f32 %v2528_v52 }
 0xb2d   : > { %v3857_v56 = vpop.eup %3856 }
 0xb2e   : > { %v2535_v57 = vmul.f32 %v3857_v56, %v2507_v13 }
 0xb30   : > { %v2543_v37 = vmul.f32 %v4868_v63, %v2535_v57 }
 0xb31   : > { %v3859_v0 = vpop.eup %3858 }
 0xb32   : > { %v2551_v5 = vadd.f32 %v4876_v9, %v2543_v37  ;;  %v2536_v28 = vmul.f32 %v3859_v0, %v2508_v2 }
 0xb34   : > { %2638 = vmatmul.mubr.f32.gmra.mrb[30].mxu1 %v2551_v5  ;;  %v2544_v60 = vmul.f32 %v4868_v63, %v2536_v28 }
 0xb35   : > { %2643 = vmatprep.mubr.f32.mxu1 %v4110_v11 }
 0xb36   : > { %v2552_v10 = vadd.f32 %v4876_v9, %v2544_v60 }
 0xb38   : > { %2644 = vmatmul.mubr.f32.gmra.mrb[32].mxu1 %v2552_v10 }
 0xb7b   : > { %v2633_v12 = vpop.f32.mrb[28].mxu1 }
 0xb7c   : > { %v2634_v16 = vadd.f32 %v2633_v12, %v4933_v25  ;;  %v2635_v18 = vpop.f32.mrb[29].mxu1 }
 0xb7d   : > { %v2636_v53 = vadd.f32 %v2635_v18, %v4936_v27 }
 0xb7e   : > { %v2652_v13 = vmul.f32 %v2634_v16, %v2634_v16 }
 0xb7f   : > { %v2653_v40 = vmul.f32 %v2636_v53, %v2636_v53 }
 0xb80   : > { %v2660_v14 = vmul.f32 %v2652_v13, %v2634_v16 }
 0xb81   : > { %v2661_v15 = vmul.f32 %v2653_v40, %v2636_v53 }
 0xb82   : > { %v2668_v3 = vmul.f32 0.044715, %v2660_v14 }
 0xb83   : > { %v2669_v2 = vmul.f32 0.044715, %v2661_v15 }
 0xb84   : > { %v2676_v22 = vadd.f32 %v2668_v3, %v2634_v16 }
 0xb85   : > { %v2677_v4 = vadd.f32 %v2669_v2, %v2636_v53 }
 0xb86   : > { %v2684_v63 = vmul.f32 0.7978846, %v2676_v22 }
 0xb87   : > { %v2685_v11 = vmul.f32 0.7978846, %v2677_v4 }
 0xb88   : > { %3860 = vtanh.f32 %v2684_v63 }
 0xb89   : > { %3862 = vtanh.f32 %v2685_v11 }
 0xb92   : > { %v3861_v9 = vpop.eup %3860 }
 0xb93   : > { %v3863_v58 = vpop.eup %3862  ;;  %v2700_v8 = vadd.f32 1.0, %v3861_v9 }
 0xb94   : > { %v2701_v20 = vadd.f32 1.0, %v3863_v58 }
 0xb95   : > { %v2708_v21 = vmul.f32 0.5, %v2700_v8 }
 0xb96   : > { %v2709_v23 = vmul.f32 0.5, %v2701_v20 }
 0xb97   : > { %v2716_v29 = vmul.f32 %v2708_v21, %v2634_v16 }
 0xb98   : > { %v2717_v24 = vmul.f32 %v2709_v23, %v2636_v53 }
 0xb9a   : > { %2795 = vmatprep.mubr.f32.mxu0 %v2717_v24 }
 0xb9b   : > { %2796 = vmatmul.mubr.f32.gmra.mrb[24].mxu0 %v2716_v29 }
 0xbc5   : > { %v3156_v30 = vpop.f32.mrb[22].mxu0 }
 0xbc6   : > { %v3157_v32 = vpop.f32.mrb[23].mxu0 }
 0xbc7   : > { %v3158_v34 = vadd.f32 %v3157_v32, %v3156_v30 }
 0xbc9   : > { %v2793_v1 = vadd.f32 %v3158_v34, %v4949_v19 }
 0xbcb   : > { %v2811_v35 = vadd.f32 %v2793_v1, %v4814_v45 }
 0xbcd   : > { %2815 = vst [vmem:[#allocation11] sm:$0xff] %v2811_v35 }
 0xc07   : > { %v2639_v36 = vpop.f32.mrb[30].mxu1 }
 0xc08   : > { %v2640_v41 = vadd.f32 %v2639_v36, %v4933_v25  ;;  %v2641_v42 = vpop.f32.mrb[31].mxu1 }
 0xc09   : > { %v2642_v38 = vadd.f32 %v2641_v42, %v4936_v27 }
 0xc0a   : > { %v2654_v6 = vmul.f32 %v2640_v41, %v2640_v41 }
 0xc0b   : > { %v2655_v62 = vmul.f32 %v2642_v38, %v2642_v38  ;;  %v2645_v26 = vpop.f32.mrb[32].mxu1 }
 0xc0c   : > { %v2662_v44 = vmul.f32 %v2654_v6, %v2640_v41  ;;  %v2646_v33 = vadd.f32 %v2645_v26, %v4933_v25  ;;  %v2647_v46 = vpop.f32.mrb[33].mxu1 }
 0xc0d   : > { %v2663_v47 = vmul.f32 %v2655_v62, %v2642_v38  ;;  %v2648_v7 = vadd.f32 %v2647_v46, %v4936_v27 }
 0xc0e   : > { %v2670_v48 = vmul.f32 0.044715, %v2662_v44  ;;  %v2656_v49 = vmul.f32 %v2646_v33, %v2646_v33 }
 0xc0f   : > { %v2671_v45 = vmul.f32 0.044715, %v2663_v47  ;;  %v2657_v50 = vmul.f32 %v2648_v7, %v2648_v7 }
 0xc10   : > { %v2678_v51 = vadd.f32 %v2670_v48, %v2640_v41  ;;  %v2664_v59 = vmul.f32 %v2656_v49, %v2646_v33 }
 0xc11   : > { %v2679_v54 = vadd.f32 %v2671_v45, %v2642_v38  ;;  %v2665_v55 = vmul.f32 %v2657_v50, %v2648_v7 }
 0xc12   : > { %v2686_v39 = vmul.f32 0.7978846, %v2678_v51  ;;  %v2672_v52 = vmul.f32 0.044715, %v2664_v59 }
 0xc13   : > { %v2687_v56 = vmul.f32 0.7978846, %v2679_v54  ;;  %v2673_v57 = vmul.f32 0.044715, %v2665_v55 }
 0xc14   : > { %v2680_v37 = vadd.f32 %v2672_v52, %v2646_v33  ;;  %3864 = vtanh.f32 %v2686_v39 }
 0xc15   : > { %v2681_v0 = vadd.f32 %v2673_v57, %v2648_v7  ;;  %3866 = vtanh.f32 %v2687_v56 }
 0xc16   : > { %v2688_v25 = vmul.f32 0.7978846, %v2680_v37 }
 0xc17   : > { %v2689_v5 = vmul.f32 0.7978846, %v2681_v0 }
 0xc18   : > { %3868 = vtanh.f32 %v2688_v25 }
 0xc19   : > { %3870 = vtanh.f32 %v2689_v5 }
 0xc1e   : > { %v3865_v27 = vpop.eup %3864 }
 0xc1f   : > { %v3867_v28 = vpop.eup %3866  ;;  %v2702_v60 = vadd.f32 1.0, %v3865_v27 }
 0xc20   : > { %v2703_v10 = vadd.f32 1.0, %v3867_v28 }
 0xc21   : > { %v2710_v12 = vmul.f32 0.5, %v2702_v60 }
 0xc22   : > { %v3869_v16 = vpop.eup %3868  ;;  %v2711_v18 = vmul.f32 0.5, %v2703_v10 }
 0xc23   : > { %v3871_v53 = vpop.eup %3870  ;;  %v2704_v13 = vadd.f32 1.0, %v3869_v16  ;;  %v2718_v15 = vmul.f32 %v2710_v12, %v2640_v41 }
 0xc24   : > { %v2719_v40 = vmul.f32 %v2711_v18, %v2642_v38  ;;  %v2705_v14 = vadd.f32 1.0, %v3871_v53 }
 0xc25   : > { %v2712_v3 = vmul.f32 0.5, %v2704_v13 }
 0xc26   : > { %2800 = vmatprep.mubr.f32.mxu0 %v2719_v40  ;;  %v2713_v2 = vmul.f32 0.5, %v2705_v14 }
 0xc27   : > { %2801 = vmatmul.mubr.f32.gmra.mrb[26].mxu0 %v2718_v15  ;;  %v2720_v4 = vmul.f32 %v2712_v3, %v2646_v33 }
 0xc28   : > { %v2721_v22 = vmul.f32 %v2713_v2, %v2648_v7 }
 0xc2a   : > { %2805 = vmatprep.mubr.f32.mxu0 %v2721_v22 }
 0xc2b   : > { %2806 = vmatmul.mubr.f32.gmra.mrb[28].mxu0 %v2720_v4 }
 0xc6e   : > { %v3159_v63 = vpop.f32.mrb[24].mxu0 }
 0xc6f   : > { %v3160_v11 = vpop.f32.mrb[25].mxu0 }
 0xc70   : > { %v3161_v9 = vadd.f32 %v3160_v11, %v3159_v63 }
 0xc72   : > { %v2798_v58 = vadd.f32 %v3161_v9, %v4949_v19 }
 0xc74   : > { %v2812_v8 = vadd.f32 %v2798_v58, %v4818_v43 }
 0xc76   : > { %2816 = vst [vmem:[#allocation11 + $0x8] sm:$0xff] %v2812_v8 }
 0xcfa   : > { %v3162_v20 = vpop.f32.mrb[26].mxu0 }
 0xcfb   : > { %v3163_v21 = vpop.f32.mrb[27].mxu0 }
 0xcfc   : > { %v3164_v23 = vadd.f32 %v3163_v21, %v3162_v20 }
 0xcfe   : > { %v2803_v24 = vadd.f32 %v3164_v23, %v4949_v19  ;;  %v3165_v29 = vpop.f32.mrb[28].mxu0 }
 0xcff   : > { %v3166_v30 = vpop.f32.mrb[29].mxu0 }
 0xd00   : > { %v2813_v31 = vadd.f32 %v2803_v24, %v4879_v17  ;;  %v3167_v32 = vadd.f32 %v3166_v30, %v3165_v29 }
 0xd02   : > { %2817 = vst [vmem:[#allocation11 + $0x10] sm:$0xff] %v2813_v31  ;;  %v2808_v34 = vadd.f32 %v3167_v32, %v4949_v19 }
 0xd04   : > { %v2814_v43 = vadd.f32 %v2808_v34, %v4887_v61 }
 0xd06   : > { %2818 = vst [vmem:[#allocation11 + $0x18] sm:$0xff] %v2814_v43 }
 0xd07   : > { %4040 = shalt.err (!%p4037_p10)
}
 0xd08   : > { %s4041_s1 = scalar_lea.hbm %s5004_s5, 512 }
 0xd09   : > { %p4042_p8 = scmp.ne.s32.totalorder %s5004_s5, %s4041_s1  ;;  %p4047_p1 = scmp.lt.u32.totalorder %s4041_s1, %s5004_s5 }
 0xd0b   : > { %p4043_p7 = pnand %p4042_p8, %p3640_p12 }
 0xd0d   : > { %p4044_p9 = pneg %p4043_p7 }
 0xd0f   : > { %p4049_p4 = pnand %p4047_p1, %p4044_p9 }
 0xd11   : > { %4052 = shalt.err (!%p4049_p4)
}
 0xd12   : > { %s4115_s23 = smov 128   ;;  %s4116_s18 = smov 8  }
 0xd13   : > { %3617 = dma.vmem_to_hbm [thread:$0]  (%p3640_p12), %s2826_s30, 512, %s5004_s5, [#allocation4], %s4115_s23, %s4115_s23, %s4116_s18  }
 0xd14   : > { %4082 = dma.done.wait (%p3640_p12), [#allocation4], 512  }
 0xd15   : > { %4084 = vsyncadd (%p3640_p12), [#allocation4], 4294966784 }
 0xd16 PF: > { %p20_p11 = scmp.ge.s32.totalorder %s4168_s22, 5   ;;  %s5033_s18 = smov %s4091_s19 }
 0xd17   : > { %s5034_s19 = smov %s4095_s20  ;;  %s5035_s20 = smov %s4178_s25 }
 0xd18   : > { %s5036_s21 = smov %s4168_s22  ;;  %22 = sbr.rel (!%p20_p11) target bundleno = 9 (0x9), region = 121 }
 0xd1f   :  { %2841 = vsyncpa [#allocation3], 1 }
 0xd20   :  { %2843 = vsyncpa [#allocation3 + $0x1], 1 }
 0xd21   :  { %2844 = vsyncpa [#allocation6], 1 }
 0xd22   :  { %2846 = vsyncpa [#allocation6 + $0x1], 1 }
 0xd23   :  { %2847 = vsyncpa [#allocation9], 1 }
 0xd24   :  { %2849 = vsyncpa [#allocation9 + $0x1], 1 }
 0xd25   :  { %2850 = vsyncpa [#allocation4], 1 }
 0xd26   :  { %2852 = vsyncpa [#allocation4 + $0x1], 1 }

</bundles_post_ra>
